<compile_context>
chip_gen: v7x
topology: tpu7x:2x2x1
jax: 0.10.0
libtpu: 0.0.40
codegen_flags: <defaults>
</compile_context>

<pallas_src>
import functools

import jax
import jax.numpy as jnp
from jax.experimental import pallas as pl
from jax.experimental.pallas import tpu as pltpu


LAYER_SIZES = [3, 3, 3, 3, 3, 1]
USE_SHORTCUT = True

_SQRT_2_OVER_PI = 0.7978845608028654  # sqrt(2 / pi)


def _gelu_tanh(x):
    # 0.5 * x * (1 + tanh(sqrt(2/pi) * (x + 0.044715 * x**3)))
    # Matches the custom GELU module in the PyTorch spec exactly.
    return 0.5 * x * (1.0 + jnp.tanh(_SQRT_2_OVER_PI * (x + 0.044715 * (x * x * x))))


def _dnn_kernel(w_ref, b_ref, x_ref, out_ref, *, layer_sizes, use_shortcut,
                compute_dtype):
    """One lane+sublane-dense batch tile.

    w_ref  : [n_layers * f_max * f_max] f32, SMEM, row-major (layer, out, in)
             (PyTorch nn.Linear weight layout [out, in], zero-padded to f_max).
    b_ref  : [n_layers * f_max]         f32, SMEM, row-major (layer, out).
    x_ref  : [f_in,  sub_tile, 128] VMEM  (batch packed densely on sublanes+lanes).
    out_ref: [f_out, sub_tile, 128] VMEM  (same dense packing -> unmasked vst).
    """
    n_layers = len(layer_sizes) - 1
    f_max = max(layer_sizes)

    # Each activation "row" is a dense [sub_tile, 128] block (full vregs).
    h = [x_ref[r].astype(compute_dtype) for r in range(layer_sizes[0])]

    for l in range(n_layers):
        f_in, f_out = layer_sizes[l], layer_sizes[l + 1]
        y = []
        for o in range(f_out):
            base = (l * f_max + o) * f_max
            # Unrolled broadcast-FMA on the VPU:
            #   y[o] = GELU( sum_i W[o, i] * h[i] + b[o] )
            acc = w_ref[base + 0].astype(compute_dtype) * h[0]
            for i in range(1, f_in):
                acc = acc + w_ref[base + i].astype(compute_dtype) * h[i]
            acc = acc + b_ref[l * f_max + o].astype(compute_dtype)
            y.append(_gelu_tanh(acc))
        # Shortcut decision is static (shapes known at trace time), matching
        # `if self.use_shortcut and x.shape == layer_output.shape`.
        if use_shortcut and f_in == f_out:
            h = [h[i] + y[i] for i in range(f_out)]
        else:
            h = y

    for o in range(len(h)):
        out_ref[o, :, :] = h[o].astype(out_ref.dtype)


def dnn_forward_packed(x_packed, w_packed, b_packed, *, layer_sizes=LAYER_SIZES,
                       use_shortcut=True, batch_tile=2048,
                       compute_dtype=jnp.float32):
    """Fast path: input already in the packed [f_in, n_sub, 128] layout.

    x_packed: [f_in, n_sub, 128]  (batch = n_sub * 128, element (r, s, l) is
              feature r of batch index s*128 + l).  Handing this layout over
              directly avoids any wrapper-side HBM relayout pass.
    w_packed: [n_layers, f_max, f_max]  (layer l uses [:f_out, :f_in], PyTorch [out, in]).
    b_packed: [n_layers, f_max]         (layer l uses [:f_out]).
    Returns packed output [f_out, n_sub, 128].
    """
    f_in, n_sub, lane = x_packed.shape
    assert lane == 128, "last dim must be the 128-lane axis"
    assert f_in == layer_sizes[0], (f_in, layer_sizes[0])
    assert batch_tile % 1024 == 0, (
        "batch_tile must be a multiple of 1024 (sub_tile multiple of 8)")
    sub_tile = batch_tile // 128
    assert n_sub % sub_tile == 0, (n_sub, sub_tile)
    f_out = layer_sizes[-1]

    w_flat = w_packed.reshape(-1).astype(jnp.float32)
    b_flat = b_packed.reshape(-1).astype(jnp.float32)

    kernel = functools.partial(
        _dnn_kernel, layer_sizes=tuple(layer_sizes), use_shortcut=use_shortcut,
        compute_dtype=compute_dtype)

    return pl.pallas_call(
        kernel,
        out_shape=jax.ShapeDtypeStruct((f_out, n_sub, 128), x_packed.dtype),
        grid=(n_sub // sub_tile,),
        in_specs=[
            # Packed params: tiny f32 scalar tables, resident in SMEM.
            pl.BlockSpec(memory_space=pltpu.MemorySpace.SMEM),
            pl.BlockSpec(memory_space=pltpu.MemorySpace.SMEM),
            # Dense sublane+lane batch tile, pipelined over the batch grid.
            pl.BlockSpec((f_in, sub_tile, 128), lambda i: (0, i, 0)),
        ],
        out_specs=pl.BlockSpec((f_out, sub_tile, 128), lambda i: (0, i, 0)),
        compiler_params=pltpu.CompilerParams(
            # Batch grid axis is embarrassingly parallel -> shardable across
            # TensorCores on multi-TC chips (v7x).  Keep the grid >= 2 steps.
            dimension_semantics=("parallel",),
        ),
    )(w_flat, b_flat, x_packed)


def pack_batch_major(x, batch_tile):
    """[B, f] batch-major -> ([f, n_sub, 128] packed, B).

    Costs one fused pad+transpose HBM pass; producers that can emit the packed
    layout directly should call `dnn_forward_packed` instead.
    """
    B, f = x.shape
    b_pad = -(-B // batch_tile) * batch_tile
    xp = x if b_pad == B else jnp.zeros((b_pad, f), x.dtype).at[:B, :].set(x)
    return xp.T.reshape(f, b_pad // 128, 128), B


def dnn_forward(x, w_packed, b_packed, *, layer_sizes=LAYER_SIZES,
                use_shortcut=True, batch_tile=2048, compute_dtype=jnp.float32):
    """Convenience wrapper: x [B, f_in] batch-major -> [B, f_out]."""
    B = x.shape[0]
    f_out = layer_sizes[-1]
    x_packed, _ = pack_batch_major(x, batch_tile)
    out_packed = dnn_forward_packed(
        x_packed, w_packed, b_packed, layer_sizes=layer_sizes,
        use_shortcut=use_shortcut, batch_tile=batch_tile,
        compute_dtype=compute_dtype)
    b_pad = out_packed.shape[1] * 128
    # [f_out, n_sub, 128] -> [f_out, b_pad] -> [B, f_out].  For f_out == 1 this
    # is a pure metadata reshape (no extra HBM pass).
    return out_packed.reshape(f_out, b_pad)[:, :B].T


def init_params(key, layer_sizes):
    """nn.Linear-style init (uniform(-1/sqrt(fan_in), 1/sqrt(fan_in))), packed."""
    n_layers = len(layer_sizes) - 1
    f_max = max(layer_sizes)
    w_packed = jnp.zeros((n_layers, f_max, f_max), jnp.float32)
    b_packed = jnp.zeros((n_layers, f_max), jnp.float32)
    for l in range(n_layers):
        fan_in, fan_out = layer_sizes[l], layer_sizes[l + 1]
        key, kw, kb = jax.random.split(key, 3)
        bound = 1.0 / float(fan_in) ** 0.5
        w = jax.random.uniform(kw, (fan_out, fan_in), jnp.float32,
                               minval=-bound, maxval=bound)
        b = jax.random.uniform(kb, (fan_out,), jnp.float32,
                               minval=-bound, maxval=bound)
        w_packed = w_packed.at[l, :fan_out, :fan_in].set(w)
        b_packed = b_packed.at[l, :fan_out].set(b)
    return w_packed, b_packed


def reference_forward(x, w_packed, b_packed, *, layer_sizes=LAYER_SIZES,
                      use_shortcut=True):
    """Pure-JAX reference matching the PyTorch forward."""
    h = x
    n_layers = len(layer_sizes) - 1
    for l in range(n_layers):
        f_in, f_out = layer_sizes[l], layer_sizes[l + 1]
        w = w_packed[l, :f_out, :f_in]  # [out, in]
        b = b_packed[l, :f_out]
        y = _gelu_tanh(h @ w.T + b)
        if use_shortcut and y.shape == h.shape:
            h = h + y
        else:
            h = y
    return h


if __name__ == "__main__":
    key = jax.random.PRNGKey(0)
    k_x, k_p = jax.random.split(key)

    # Forward requires last dim == layer_sizes[0] == 3.  Batch chosen so the
    # padded grid has 3 dense tiles of 2048 (exercises multi-step pipelining,
    # multi-core grid sharding on v7x, and the non-divisible-batch pad path).
    batch = 4196
    batch_tile = 2048
    x = jax.random.uniform(k_x, (batch, LAYER_SIZES[0]), jnp.float32)
    w_packed, b_packed = init_params(k_p, LAYER_SIZES)

    out = dnn_forward(x, w_packed, b_packed, use_shortcut=USE_SHORTCUT,
                      batch_tile=batch_tile)
    out = jax.block_until_ready(out)

    ref = reference_forward(x, w_packed, b_packed, use_shortcut=USE_SHORTCUT)
    assert out.shape == (batch, LAYER_SIZES[-1]), out.shape
    assert jnp.allclose(out, ref, atol=1e-5, rtol=1e-5), (out, ref)

    # TODO(synk): on v6e/v7x, pass compute_dtype=jnp.bfloat16 (and bf16
    # activations) for ~2x VALU/EUP throughput; keep f32 on v5e.

    print("KERNEL_OK")
</pallas_src>

<mosaic_0001>
module attributes {stable_mosaic.version = 11 : i64} {
  func.func @_dnn_kernel(%arg0: i32, %arg1: memref<45xf32, #tpu.memory_space<smem>>, %arg2: memref<15xf32, #tpu.memory_space<smem>>, %arg3: memref<3x16x128xf32, #tpu.memory_space<vmem>>, %arg4: memref<1x16x128xf32, #tpu.memory_space<vmem>>) attributes {dimension_semantics = [#tpu.dimension_semantics<parallel>], iteration_bounds = array<i64: 3>, scalar_prefetch = 0 : i64, scratch_operands = 0 : i64, tpu.core_type = #tpu.core_type<tc>, window_params = [{transform_indices = @transform_0, window_bounds = array<i64: 45>}, {transform_indices = @transform_1, window_bounds = array<i64: 15>}, {transform_indices = @transform_2, window_bounds = array<i64: 3, 16, 128>}, {transform_indices = @transform_3, window_bounds = array<i64: 1, 16, 128>}]} {
    %c0 = arith.constant 0 : index
    %c0_0 = arith.constant 0 : index
    %c0_1 = arith.constant 0 : index
    %0 = vector.load %arg3[%c0, %c0_0, %c0_1] : memref<3x16x128xf32, #tpu.memory_space<vmem>>, vector<1x16x128xf32>
    %1 = vector.shape_cast %0 : vector<1x16x128xf32> to vector<16x128xf32>
    %c1 = arith.constant 1 : index
    %c0_2 = arith.constant 0 : index
    %c0_3 = arith.constant 0 : index
    %2 = vector.load %arg3[%c1, %c0_2, %c0_3] : memref<3x16x128xf32, #tpu.memory_space<vmem>>, vector<1x16x128xf32>
    %3 = vector.shape_cast %2 : vector<1x16x128xf32> to vector<16x128xf32>
    %c2 = arith.constant 2 : index
    %c0_4 = arith.constant 0 : index
    %c0_5 = arith.constant 0 : index
    %4 = vector.load %arg3[%c2, %c0_4, %c0_5] : memref<3x16x128xf32, #tpu.memory_space<vmem>>, vector<1x16x128xf32>
    %5 = vector.shape_cast %4 : vector<1x16x128xf32> to vector<16x128xf32>
    %c0_6 = arith.constant 0 : index
    %6 = memref.load %arg1[%c0_6] : memref<45xf32, #tpu.memory_space<smem>>
    %7 = vector.broadcast %6 : f32 to vector<16x128xf32>
    %8 = arith.mulf %7, %1 : vector<16x128xf32>
    %c1_7 = arith.constant 1 : index
    %9 = memref.load %arg1[%c1_7] : memref<45xf32, #tpu.memory_space<smem>>
    %10 = vector.broadcast %9 : f32 to vector<16x128xf32>
    %11 = arith.mulf %10, %3 : vector<16x128xf32>
    %12 = arith.addf %8, %11 : vector<16x128xf32>
    %c2_8 = arith.constant 2 : index
    %13 = memref.load %arg1[%c2_8] : memref<45xf32, #tpu.memory_space<smem>>
    %14 = vector.broadcast %13 : f32 to vector<16x128xf32>
    %15 = arith.mulf %14, %5 : vector<16x128xf32>
    %16 = arith.addf %12, %15 : vector<16x128xf32>
    %c0_9 = arith.constant 0 : index
    %17 = memref.load %arg2[%c0_9] : memref<15xf32, #tpu.memory_space<smem>>
    %18 = vector.broadcast %17 : f32 to vector<16x128xf32>
    %19 = arith.addf %16, %18 : vector<16x128xf32>
    %cst = arith.constant 5.000000e-01 : f32
    %20 = vector.broadcast %cst : f32 to vector<16x128xf32>
    %21 = arith.mulf %20, %19 : vector<16x128xf32>
    %22 = arith.mulf %19, %19 : vector<16x128xf32>
    %23 = arith.mulf %22, %19 : vector<16x128xf32>
    %cst_10 = arith.constant 4.471500e-02 : f32
    %24 = vector.broadcast %cst_10 : f32 to vector<16x128xf32>
    %25 = arith.mulf %24, %23 : vector<16x128xf32>
    %26 = arith.addf %19, %25 : vector<16x128xf32>
    %cst_11 = arith.constant 0.797884583 : f32
    %27 = vector.broadcast %cst_11 : f32 to vector<16x128xf32>
    %28 = arith.mulf %27, %26 : vector<16x128xf32>
    %29 = math.tanh %28 : vector<16x128xf32>
    %cst_12 = arith.constant 1.000000e+00 : f32
    %30 = vector.broadcast %cst_12 : f32 to vector<16x128xf32>
    %31 = arith.addf %30, %29 : vector<16x128xf32>
    %32 = arith.mulf %21, %31 : vector<16x128xf32>
    %c3 = arith.constant 3 : index
    %33 = memref.load %arg1[%c3] : memref<45xf32, #tpu.memory_space<smem>>
    %34 = vector.broadcast %33 : f32 to vector<16x128xf32>
    %35 = arith.mulf %34, %1 : vector<16x128xf32>
    %c4 = arith.constant 4 : index
    %36 = memref.load %arg1[%c4] : memref<45xf32, #tpu.memory_space<smem>>
    %37 = vector.broadcast %36 : f32 to vector<16x128xf32>
    %38 = arith.mulf %37, %3 : vector<16x128xf32>
    %39 = arith.addf %35, %38 : vector<16x128xf32>
    %c5 = arith.constant 5 : index
    %40 = memref.load %arg1[%c5] : memref<45xf32, #tpu.memory_space<smem>>
    %41 = vector.broadcast %40 : f32 to vector<16x128xf32>
    %42 = arith.mulf %41, %5 : vector<16x128xf32>
    %43 = arith.addf %39, %42 : vector<16x128xf32>
    %c1_13 = arith.constant 1 : index
    %44 = memref.load %arg2[%c1_13] : memref<15xf32, #tpu.memory_space<smem>>
    %45 = vector.broadcast %44 : f32 to vector<16x128xf32>
    %46 = arith.addf %43, %45 : vector<16x128xf32>
    %cst_14 = arith.constant 5.000000e-01 : f32
    %47 = vector.broadcast %cst_14 : f32 to vector<16x128xf32>
    %48 = arith.mulf %47, %46 : vector<16x128xf32>
    %49 = arith.mulf %46, %46 : vector<16x128xf32>
    %50 = arith.mulf %49, %46 : vector<16x128xf32>
    %cst_15 = arith.constant 4.471500e-02 : f32
    %51 = vector.broadcast %cst_15 : f32 to vector<16x128xf32>
    %52 = arith.mulf %51, %50 : vector<16x128xf32>
    %53 = arith.addf %46, %52 : vector<16x128xf32>
    %cst_16 = arith.constant 0.797884583 : f32
    %54 = vector.broadcast %cst_16 : f32 to vector<16x128xf32>
    %55 = arith.mulf %54, %53 : vector<16x128xf32>
    %56 = math.tanh %55 : vector<16x128xf32>
    %cst_17 = arith.constant 1.000000e+00 : f32
    %57 = vector.broadcast %cst_17 : f32 to vector<16x128xf32>
    %58 = arith.addf %57, %56 : vector<16x128xf32>
    %59 = arith.mulf %48, %58 : vector<16x128xf32>
    %c6 = arith.constant 6 : index
    %60 = memref.load %arg1[%c6] : memref<45xf32, #tpu.memory_space<smem>>
    %61 = vector.broadcast %60 : f32 to vector<16x128xf32>
    %62 = arith.mulf %61, %1 : vector<16x128xf32>
    %c7 = arith.constant 7 : index
    %63 = memref.load %arg1[%c7] : memref<45xf32, #tpu.memory_space<smem>>
    %64 = vector.broadcast %63 : f32 to vector<16x128xf32>
    %65 = arith.mulf %64, %3 : vector<16x128xf32>
    %66 = arith.addf %62, %65 : vector<16x128xf32>
    %c8 = arith.constant 8 : index
    %67 = memref.load %arg1[%c8] : memref<45xf32, #tpu.memory_space<smem>>
    %68 = vector.broadcast %67 : f32 to vector<16x128xf32>
    %69 = arith.mulf %68, %5 : vector<16x128xf32>
    %70 = arith.addf %66, %69 : vector<16x128xf32>
    %c2_18 = arith.constant 2 : index
    %71 = memref.load %arg2[%c2_18] : memref<15xf32, #tpu.memory_space<smem>>
    %72 = vector.broadcast %71 : f32 to vector<16x128xf32>
    %73 = arith.addf %70, %72 : vector<16x128xf32>
    %cst_19 = arith.constant 5.000000e-01 : f32
    %74 = vector.broadcast %cst_19 : f32 to vector<16x128xf32>
    %75 = arith.mulf %74, %73 : vector<16x128xf32>
    %76 = arith.mulf %73, %73 : vector<16x128xf32>
    %77 = arith.mulf %76, %73 : vector<16x128xf32>
    %cst_20 = arith.constant 4.471500e-02 : f32
    %78 = vector.broadcast %cst_20 : f32 to vector<16x128xf32>
    %79 = arith.mulf %78, %77 : vector<16x128xf32>
    %80 = arith.addf %73, %79 : vector<16x128xf32>
    %cst_21 = arith.constant 0.797884583 : f32
    %81 = vector.broadcast %cst_21 : f32 to vector<16x128xf32>
    %82 = arith.mulf %81, %80 : vector<16x128xf32>
    %83 = math.tanh %82 : vector<16x128xf32>
    %cst_22 = arith.constant 1.000000e+00 : f32
    %84 = vector.broadcast %cst_22 : f32 to vector<16x128xf32>
    %85 = arith.addf %84, %83 : vector<16x128xf32>
    %86 = arith.mulf %75, %85 : vector<16x128xf32>
    %87 = arith.addf %1, %32 : vector<16x128xf32>
    %88 = arith.addf %3, %59 : vector<16x128xf32>
    %89 = arith.addf %5, %86 : vector<16x128xf32>
    %c9 = arith.constant 9 : index
    %90 = memref.load %arg1[%c9] : memref<45xf32, #tpu.memory_space<smem>>
    %91 = vector.broadcast %90 : f32 to vector<16x128xf32>
    %92 = arith.mulf %91, %87 : vector<16x128xf32>
    %c10 = arith.constant 10 : index
    %93 = memref.load %arg1[%c10] : memref<45xf32, #tpu.memory_space<smem>>
    %94 = vector.broadcast %93 : f32 to vector<16x128xf32>
    %95 = arith.mulf %94, %88 : vector<16x128xf32>
    %96 = arith.addf %92, %95 : vector<16x128xf32>
    %c11 = arith.constant 11 : index
    %97 = memref.load %arg1[%c11] : memref<45xf32, #tpu.memory_space<smem>>
    %98 = vector.broadcast %97 : f32 to vector<16x128xf32>
    %99 = arith.mulf %98, %89 : vector<16x128xf32>
    %100 = arith.addf %96, %99 : vector<16x128xf32>
    %c3_23 = arith.constant 3 : index
    %101 = memref.load %arg2[%c3_23] : memref<15xf32, #tpu.memory_space<smem>>
    %102 = vector.broadcast %101 : f32 to vector<16x128xf32>
    %103 = arith.addf %100, %102 : vector<16x128xf32>
    %cst_24 = arith.constant 5.000000e-01 : f32
    %104 = vector.broadcast %cst_24 : f32 to vector<16x128xf32>
    %105 = arith.mulf %104, %103 : vector<16x128xf32>
    %106 = arith.mulf %103, %103 : vector<16x128xf32>
    %107 = arith.mulf %106, %103 : vector<16x128xf32>
    %cst_25 = arith.constant 4.471500e-02 : f32
    %108 = vector.broadcast %cst_25 : f32 to vector<16x128xf32>
    %109 = arith.mulf %108, %107 : vector<16x128xf32>
    %110 = arith.addf %103, %109 : vector<16x128xf32>
    %cst_26 = arith.constant 0.797884583 : f32
    %111 = vector.broadcast %cst_26 : f32 to vector<16x128xf32>
    %112 = arith.mulf %111, %110 : vector<16x128xf32>
    %113 = math.tanh %112 : vector<16x128xf32>
    %cst_27 = arith.constant 1.000000e+00 : f32
    %114 = vector.broadcast %cst_27 : f32 to vector<16x128xf32>
    %115 = arith.addf %114, %113 : vector<16x128xf32>
    %116 = arith.mulf %105, %115 : vector<16x128xf32>
    %c12 = arith.constant 12 : index
    %117 = memref.load %arg1[%c12] : memref<45xf32, #tpu.memory_space<smem>>
    %118 = vector.broadcast %117 : f32 to vector<16x128xf32>
    %119 = arith.mulf %118, %87 : vector<16x128xf32>
    %c13 = arith.constant 13 : index
    %120 = memref.load %arg1[%c13] : memref<45xf32, #tpu.memory_space<smem>>
    %121 = vector.broadcast %120 : f32 to vector<16x128xf32>
    %122 = arith.mulf %121, %88 : vector<16x128xf32>
    %123 = arith.addf %119, %122 : vector<16x128xf32>
    %c14 = arith.constant 14 : index
    %124 = memref.load %arg1[%c14] : memref<45xf32, #tpu.memory_space<smem>>
    %125 = vector.broadcast %124 : f32 to vector<16x128xf32>
    %126 = arith.mulf %125, %89 : vector<16x128xf32>
    %127 = arith.addf %123, %126 : vector<16x128xf32>
    %c4_28 = arith.constant 4 : index
    %128 = memref.load %arg2[%c4_28] : memref<15xf32, #tpu.memory_space<smem>>
    %129 = vector.broadcast %128 : f32 to vector<16x128xf32>
    %130 = arith.addf %127, %129 : vector<16x128xf32>
    %cst_29 = arith.constant 5.000000e-01 : f32
    %131 = vector.broadcast %cst_29 : f32 to vector<16x128xf32>
    %132 = arith.mulf %131, %130 : vector<16x128xf32>
    %133 = arith.mulf %130, %130 : vector<16x128xf32>
    %134 = arith.mulf %133, %130 : vector<16x128xf32>
    %cst_30 = arith.constant 4.471500e-02 : f32
    %135 = vector.broadcast %cst_30 : f32 to vector<16x128xf32>
    %136 = arith.mulf %135, %134 : vector<16x128xf32>
    %137 = arith.addf %130, %136 : vector<16x128xf32>
    %cst_31 = arith.constant 0.797884583 : f32
    %138 = vector.broadcast %cst_31 : f32 to vector<16x128xf32>
    %139 = arith.mulf %138, %137 : vector<16x128xf32>
    %140 = math.tanh %139 : vector<16x128xf32>
    %cst_32 = arith.constant 1.000000e+00 : f32
    %141 = vector.broadcast %cst_32 : f32 to vector<16x128xf32>
    %142 = arith.addf %141, %140 : vector<16x128xf32>
    %143 = arith.mulf %132, %142 : vector<16x128xf32>
    %c15 = arith.constant 15 : index
    %144 = memref.load %arg1[%c15] : memref<45xf32, #tpu.memory_space<smem>>
    %145 = vector.broadcast %144 : f32 to vector<16x128xf32>
    %146 = arith.mulf %145, %87 : vector<16x128xf32>
    %c16 = arith.constant 16 : index
    %147 = memref.load %arg1[%c16] : memref<45xf32, #tpu.memory_space<smem>>
    %148 = vector.broadcast %147 : f32 to vector<16x128xf32>
    %149 = arith.mulf %148, %88 : vector<16x128xf32>
    %150 = arith.addf %146, %149 : vector<16x128xf32>
    %c17 = arith.constant 17 : index
    %151 = memref.load %arg1[%c17] : memref<45xf32, #tpu.memory_space<smem>>
    %152 = vector.broadcast %151 : f32 to vector<16x128xf32>
    %153 = arith.mulf %152, %89 : vector<16x128xf32>
    %154 = arith.addf %150, %153 : vector<16x128xf32>
    %c5_33 = arith.constant 5 : index
    %155 = memref.load %arg2[%c5_33] : memref<15xf32, #tpu.memory_space<smem>>
    %156 = vector.broadcast %155 : f32 to vector<16x128xf32>
    %157 = arith.addf %154, %156 : vector<16x128xf32>
    %cst_34 = arith.constant 5.000000e-01 : f32
    %158 = vector.broadcast %cst_34 : f32 to vector<16x128xf32>
    %159 = arith.mulf %158, %157 : vector<16x128xf32>
    %160 = arith.mulf %157, %157 : vector<16x128xf32>
    %161 = arith.mulf %160, %157 : vector<16x128xf32>
    %cst_35 = arith.constant 4.471500e-02 : f32
    %162 = vector.broadcast %cst_35 : f32 to vector<16x128xf32>
    %163 = arith.mulf %162, %161 : vector<16x128xf32>
    %164 = arith.addf %157, %163 : vector<16x128xf32>
    %cst_36 = arith.constant 0.797884583 : f32
    %165 = vector.broadcast %cst_36 : f32 to vector<16x128xf32>
    %166 = arith.mulf %165, %164 : vector<16x128xf32>
    %167 = math.tanh %166 : vector<16x128xf32>
    %cst_37 = arith.constant 1.000000e+00 : f32
    %168 = vector.broadcast %cst_37 : f32 to vector<16x128xf32>
    %169 = arith.addf %168, %167 : vector<16x128xf32>
    %170 = arith.mulf %159, %169 : vector<16x128xf32>
    %171 = arith.addf %87, %116 : vector<16x128xf32>
    %172 = arith.addf %88, %143 : vector<16x128xf32>
    %173 = arith.addf %89, %170 : vector<16x128xf32>
    %c18 = arith.constant 18 : index
    %174 = memref.load %arg1[%c18] : memref<45xf32, #tpu.memory_space<smem>>
    %175 = vector.broadcast %174 : f32 to vector<16x128xf32>
    %176 = arith.mulf %175, %171 : vector<16x128xf32>
    %c19 = arith.constant 19 : index
    %177 = memref.load %arg1[%c19] : memref<45xf32, #tpu.memory_space<smem>>
    %178 = vector.broadcast %177 : f32 to vector<16x128xf32>
    %179 = arith.mulf %178, %172 : vector<16x128xf32>
    %180 = arith.addf %176, %179 : vector<16x128xf32>
    %c20 = arith.constant 20 : index
    %181 = memref.load %arg1[%c20] : memref<45xf32, #tpu.memory_space<smem>>
    %182 = vector.broadcast %181 : f32 to vector<16x128xf32>
    %183 = arith.mulf %182, %173 : vector<16x128xf32>
    %184 = arith.addf %180, %183 : vector<16x128xf32>
    %c6_38 = arith.constant 6 : index
    %185 = memref.load %arg2[%c6_38] : memref<15xf32, #tpu.memory_space<smem>>
    %186 = vector.broadcast %185 : f32 to vector<16x128xf32>
    %187 = arith.addf %184, %186 : vector<16x128xf32>
    %cst_39 = arith.constant 5.000000e-01 : f32
    %188 = vector.broadcast %cst_39 : f32 to vector<16x128xf32>
    %189 = arith.mulf %188, %187 : vector<16x128xf32>
    %190 = arith.mulf %187, %187 : vector<16x128xf32>
    %191 = arith.mulf %190, %187 : vector<16x128xf32>
    %cst_40 = arith.constant 4.471500e-02 : f32
    %192 = vector.broadcast %cst_40 : f32 to vector<16x128xf32>
    %193 = arith.mulf %192, %191 : vector<16x128xf32>
    %194 = arith.addf %187, %193 : vector<16x128xf32>
    %cst_41 = arith.constant 0.797884583 : f32
    %195 = vector.broadcast %cst_41 : f32 to vector<16x128xf32>
    %196 = arith.mulf %195, %194 : vector<16x128xf32>
    %197 = math.tanh %196 : vector<16x128xf32>
    %cst_42 = arith.constant 1.000000e+00 : f32
    %198 = vector.broadcast %cst_42 : f32 to vector<16x128xf32>
    %199 = arith.addf %198, %197 : vector<16x128xf32>
    %200 = arith.mulf %189, %199 : vector<16x128xf32>
    %c21 = arith.constant 21 : index
    %201 = memref.load %arg1[%c21] : memref<45xf32, #tpu.memory_space<smem>>
    %202 = vector.broadcast %201 : f32 to vector<16x128xf32>
    %203 = arith.mulf %202, %171 : vector<16x128xf32>
    %c22 = arith.constant 22 : index
    %204 = memref.load %arg1[%c22] : memref<45xf32, #tpu.memory_space<smem>>
    %205 = vector.broadcast %204 : f32 to vector<16x128xf32>
    %206 = arith.mulf %205, %172 : vector<16x128xf32>
    %207 = arith.addf %203, %206 : vector<16x128xf32>
    %c23 = arith.constant 23 : index
    %208 = memref.load %arg1[%c23] : memref<45xf32, #tpu.memory_space<smem>>
    %209 = vector.broadcast %208 : f32 to vector<16x128xf32>
    %210 = arith.mulf %209, %173 : vector<16x128xf32>
    %211 = arith.addf %207, %210 : vector<16x128xf32>
    %c7_43 = arith.constant 7 : index
    %212 = memref.load %arg2[%c7_43] : memref<15xf32, #tpu.memory_space<smem>>
    %213 = vector.broadcast %212 : f32 to vector<16x128xf32>
    %214 = arith.addf %211, %213 : vector<16x128xf32>
    %cst_44 = arith.constant 5.000000e-01 : f32
    %215 = vector.broadcast %cst_44 : f32 to vector<16x128xf32>
    %216 = arith.mulf %215, %214 : vector<16x128xf32>
    %217 = arith.mulf %214, %214 : vector<16x128xf32>
    %218 = arith.mulf %217, %214 : vector<16x128xf32>
    %cst_45 = arith.constant 4.471500e-02 : f32
    %219 = vector.broadcast %cst_45 : f32 to vector<16x128xf32>
    %220 = arith.mulf %219, %218 : vector<16x128xf32>
    %221 = arith.addf %214, %220 : vector<16x128xf32>
    %cst_46 = arith.constant 0.797884583 : f32
    %222 = vector.broadcast %cst_46 : f32 to vector<16x128xf32>
    %223 = arith.mulf %222, %221 : vector<16x128xf32>
    %224 = math.tanh %223 : vector<16x128xf32>
    %cst_47 = arith.constant 1.000000e+00 : f32
    %225 = vector.broadcast %cst_47 : f32 to vector<16x128xf32>
    %226 = arith.addf %225, %224 : vector<16x128xf32>
    %227 = arith.mulf %216, %226 : vector<16x128xf32>
    %c24 = arith.constant 24 : index
    %228 = memref.load %arg1[%c24] : memref<45xf32, #tpu.memory_space<smem>>
    %229 = vector.broadcast %228 : f32 to vector<16x128xf32>
    %230 = arith.mulf %229, %171 : vector<16x128xf32>
    %c25 = arith.constant 25 : index
    %231 = memref.load %arg1[%c25] : memref<45xf32, #tpu.memory_space<smem>>
    %232 = vector.broadcast %231 : f32 to vector<16x128xf32>
    %233 = arith.mulf %232, %172 : vector<16x128xf32>
    %234 = arith.addf %230, %233 : vector<16x128xf32>
    %c26 = arith.constant 26 : index
    %235 = memref.load %arg1[%c26] : memref<45xf32, #tpu.memory_space<smem>>
    %236 = vector.broadcast %235 : f32 to vector<16x128xf32>
    %237 = arith.mulf %236, %173 : vector<16x128xf32>
    %238 = arith.addf %234, %237 : vector<16x128xf32>
    %c8_48 = arith.constant 8 : index
    %239 = memref.load %arg2[%c8_48] : memref<15xf32, #tpu.memory_space<smem>>
    %240 = vector.broadcast %239 : f32 to vector<16x128xf32>
    %241 = arith.addf %238, %240 : vector<16x128xf32>
    %cst_49 = arith.constant 5.000000e-01 : f32
    %242 = vector.broadcast %cst_49 : f32 to vector<16x128xf32>
    %243 = arith.mulf %242, %241 : vector<16x128xf32>
    %244 = arith.mulf %241, %241 : vector<16x128xf32>
    %245 = arith.mulf %244, %241 : vector<16x128xf32>
    %cst_50 = arith.constant 4.471500e-02 : f32
    %246 = vector.broadcast %cst_50 : f32 to vector<16x128xf32>
    %247 = arith.mulf %246, %245 : vector<16x128xf32>
    %248 = arith.addf %241, %247 : vector<16x128xf32>
    %cst_51 = arith.constant 0.797884583 : f32
    %249 = vector.broadcast %cst_51 : f32 to vector<16x128xf32>
    %250 = arith.mulf %249, %248 : vector<16x128xf32>
    %251 = math.tanh %250 : vector<16x128xf32>
    %cst_52 = arith.constant 1.000000e+00 : f32
    %252 = vector.broadcast %cst_52 : f32 to vector<16x128xf32>
    %253 = arith.addf %252, %251 : vector<16x128xf32>
    %254 = arith.mulf %243, %253 : vector<16x128xf32>
    %255 = arith.addf %171, %200 : vector<16x128xf32>
    %256 = arith.addf %172, %227 : vector<16x128xf32>
    %257 = arith.addf %173, %254 : vector<16x128xf32>
    %c27 = arith.constant 27 : index
    %258 = memref.load %arg1[%c27] : memref<45xf32, #tpu.memory_space<smem>>
    %259 = vector.broadcast %258 : f32 to vector<16x128xf32>
    %260 = arith.mulf %259, %255 : vector<16x128xf32>
    %c28 = arith.constant 28 : index
    %261 = memref.load %arg1[%c28] : memref<45xf32, #tpu.memory_space<smem>>
    %262 = vector.broadcast %261 : f32 to vector<16x128xf32>
    %263 = arith.mulf %262, %256 : vector<16x128xf32>
    %264 = arith.addf %260, %263 : vector<16x128xf32>
    %c29 = arith.constant 29 : index
    %265 = memref.load %arg1[%c29] : memref<45xf32, #tpu.memory_space<smem>>
    %266 = vector.broadcast %265 : f32 to vector<16x128xf32>
    %267 = arith.mulf %266, %257 : vector<16x128xf32>
    %268 = arith.addf %264, %267 : vector<16x128xf32>
    %c9_53 = arith.constant 9 : index
    %269 = memref.load %arg2[%c9_53] : memref<15xf32, #tpu.memory_space<smem>>
    %270 = vector.broadcast %269 : f32 to vector<16x128xf32>
    %271 = arith.addf %268, %270 : vector<16x128xf32>
    %cst_54 = arith.constant 5.000000e-01 : f32
    %272 = vector.broadcast %cst_54 : f32 to vector<16x128xf32>
    %273 = arith.mulf %272, %271 : vector<16x128xf32>
    %274 = arith.mulf %271, %271 : vector<16x128xf32>
    %275 = arith.mulf %274, %271 : vector<16x128xf32>
    %cst_55 = arith.constant 4.471500e-02 : f32
    %276 = vector.broadcast %cst_55 : f32 to vector<16x128xf32>
    %277 = arith.mulf %276, %275 : vector<16x128xf32>
    %278 = arith.addf %271, %277 : vector<16x128xf32>
    %cst_56 = arith.constant 0.797884583 : f32
    %279 = vector.broadcast %cst_56 : f32 to vector<16x128xf32>
    %280 = arith.mulf %279, %278 : vector<16x128xf32>
    %281 = math.tanh %280 : vector<16x128xf32>
    %cst_57 = arith.constant 1.000000e+00 : f32
    %282 = vector.broadcast %cst_57 : f32 to vector<16x128xf32>
    %283 = arith.addf %282, %281 : vector<16x128xf32>
    %284 = arith.mulf %273, %283 : vector<16x128xf32>
    %c30 = arith.constant 30 : index
    %285 = memref.load %arg1[%c30] : memref<45xf32, #tpu.memory_space<smem>>
    %286 = vector.broadcast %285 : f32 to vector<16x128xf32>
    %287 = arith.mulf %286, %255 : vector<16x128xf32>
    %c31 = arith.constant 31 : index
    %288 = memref.load %arg1[%c31] : memref<45xf32, #tpu.memory_space<smem>>
    %289 = vector.broadcast %288 : f32 to vector<16x128xf32>
    %290 = arith.mulf %289, %256 : vector<16x128xf32>
    %291 = arith.addf %287, %290 : vector<16x128xf32>
    %c32 = arith.constant 32 : index
    %292 = memref.load %arg1[%c32] : memref<45xf32, #tpu.memory_space<smem>>
    %293 = vector.broadcast %292 : f32 to vector<16x128xf32>
    %294 = arith.mulf %293, %257 : vector<16x128xf32>
    %295 = arith.addf %291, %294 : vector<16x128xf32>
    %c10_58 = arith.constant 10 : index
    %296 = memref.load %arg2[%c10_58] : memref<15xf32, #tpu.memory_space<smem>>
    %297 = vector.broadcast %296 : f32 to vector<16x128xf32>
    %298 = arith.addf %295, %297 : vector<16x128xf32>
    %cst_59 = arith.constant 5.000000e-01 : f32
    %299 = vector.broadcast %cst_59 : f32 to vector<16x128xf32>
    %300 = arith.mulf %299, %298 : vector<16x128xf32>
    %301 = arith.mulf %298, %298 : vector<16x128xf32>
    %302 = arith.mulf %301, %298 : vector<16x128xf32>
    %cst_60 = arith.constant 4.471500e-02 : f32
    %303 = vector.broadcast %cst_60 : f32 to vector<16x128xf32>
    %304 = arith.mulf %303, %302 : vector<16x128xf32>
    %305 = arith.addf %298, %304 : vector<16x128xf32>
    %cst_61 = arith.constant 0.797884583 : f32
    %306 = vector.broadcast %cst_61 : f32 to vector<16x128xf32>
    %307 = arith.mulf %306, %305 : vector<16x128xf32>
    %308 = math.tanh %307 : vector<16x128xf32>
    %cst_62 = arith.constant 1.000000e+00 : f32
    %309 = vector.broadcast %cst_62 : f32 to vector<16x128xf32>
    %310 = arith.addf %309, %308 : vector<16x128xf32>
    %311 = arith.mulf %300, %310 : vector<16x128xf32>
    %c33 = arith.constant 33 : index
    %312 = memref.load %arg1[%c33] : memref<45xf32, #tpu.memory_space<smem>>
    %313 = vector.broadcast %312 : f32 to vector<16x128xf32>
    %314 = arith.mulf %313, %255 : vector<16x128xf32>
    %c34 = arith.constant 34 : index
    %315 = memref.load %arg1[%c34] : memref<45xf32, #tpu.memory_space<smem>>
    %316 = vector.broadcast %315 : f32 to vector<16x128xf32>
    %317 = arith.mulf %316, %256 : vector<16x128xf32>
    %318 = arith.addf %314, %317 : vector<16x128xf32>
    %c35 = arith.constant 35 : index
    %319 = memref.load %arg1[%c35] : memref<45xf32, #tpu.memory_space<smem>>
    %320 = vector.broadcast %319 : f32 to vector<16x128xf32>
    %321 = arith.mulf %320, %257 : vector<16x128xf32>
    %322 = arith.addf %318, %321 : vector<16x128xf32>
    %c11_63 = arith.constant 11 : index
    %323 = memref.load %arg2[%c11_63] : memref<15xf32, #tpu.memory_space<smem>>
    %324 = vector.broadcast %323 : f32 to vector<16x128xf32>
    %325 = arith.addf %322, %324 : vector<16x128xf32>
    %cst_64 = arith.constant 5.000000e-01 : f32
    %326 = vector.broadcast %cst_64 : f32 to vector<16x128xf32>
    %327 = arith.mulf %326, %325 : vector<16x128xf32>
    %328 = arith.mulf %325, %325 : vector<16x128xf32>
    %329 = arith.mulf %328, %325 : vector<16x128xf32>
    %cst_65 = arith.constant 4.471500e-02 : f32
    %330 = vector.broadcast %cst_65 : f32 to vector<16x128xf32>
    %331 = arith.mulf %330, %329 : vector<16x128xf32>
    %332 = arith.addf %325, %331 : vector<16x128xf32>
    %cst_66 = arith.constant 0.797884583 : f32
    %333 = vector.broadcast %cst_66 : f32 to vector<16x128xf32>
    %334 = arith.mulf %333, %332 : vector<16x128xf32>
    %335 = math.tanh %334 : vector<16x128xf32>
    %cst_67 = arith.constant 1.000000e+00 : f32
    %336 = vector.broadcast %cst_67 : f32 to vector<16x128xf32>
    %337 = arith.addf %336, %335 : vector<16x128xf32>
    %338 = arith.mulf %327, %337 : vector<16x128xf32>
    %339 = arith.addf %255, %284 : vector<16x128xf32>
    %340 = arith.addf %256, %311 : vector<16x128xf32>
    %341 = arith.addf %257, %338 : vector<16x128xf32>
    %c36 = arith.constant 36 : index
    %342 = memref.load %arg1[%c36] : memref<45xf32, #tpu.memory_space<smem>>
    %343 = vector.broadcast %342 : f32 to vector<16x128xf32>
    %344 = arith.mulf %343, %339 : vector<16x128xf32>
    %c37 = arith.constant 37 : index
    %345 = memref.load %arg1[%c37] : memref<45xf32, #tpu.memory_space<smem>>
    %346 = vector.broadcast %345 : f32 to vector<16x128xf32>
    %347 = arith.mulf %346, %340 : vector<16x128xf32>
    %348 = arith.addf %344, %347 : vector<16x128xf32>
    %c38 = arith.constant 38 : index
    %349 = memref.load %arg1[%c38] : memref<45xf32, #tpu.memory_space<smem>>
    %350 = vector.broadcast %349 : f32 to vector<16x128xf32>
    %351 = arith.mulf %350, %341 : vector<16x128xf32>
    %352 = arith.addf %348, %351 : vector<16x128xf32>
    %c12_68 = arith.constant 12 : index
    %353 = memref.load %arg2[%c12_68] : memref<15xf32, #tpu.memory_space<smem>>
    %354 = vector.broadcast %353 : f32 to vector<16x128xf32>
    %355 = arith.addf %352, %354 : vector<16x128xf32>
    %cst_69 = arith.constant 5.000000e-01 : f32
    %356 = vector.broadcast %cst_69 : f32 to vector<16x128xf32>
    %357 = arith.mulf %356, %355 : vector<16x128xf32>
    %358 = arith.mulf %355, %355 : vector<16x128xf32>
    %359 = arith.mulf %358, %355 : vector<16x128xf32>
    %cst_70 = arith.constant 4.471500e-02 : f32
    %360 = vector.broadcast %cst_70 : f32 to vector<16x128xf32>
    %361 = arith.mulf %360, %359 : vector<16x128xf32>
    %362 = arith.addf %355, %361 : vector<16x128xf32>
    %cst_71 = arith.constant 0.797884583 : f32
    %363 = vector.broadcast %cst_71 : f32 to vector<16x128xf32>
    %364 = arith.mulf %363, %362 : vector<16x128xf32>
    %365 = math.tanh %364 : vector<16x128xf32>
    %cst_72 = arith.constant 1.000000e+00 : f32
    %366 = vector.broadcast %cst_72 : f32 to vector<16x128xf32>
    %367 = arith.addf %366, %365 : vector<16x128xf32>
    %368 = arith.mulf %357, %367 : vector<16x128xf32>
    %c0_73 = arith.constant 0 : index
    %c0_74 = arith.constant 0 : index
    %c0_75 = arith.constant 0 : index
    %369 = vector.load %arg4[%c0_73, %c0_74, %c0_75] : memref<1x16x128xf32, #tpu.memory_space<vmem>>, vector<1x16x128xf32>
    %370 = vector.shape_cast %369 : vector<1x16x128xf32> to vector<16x128xf32>
    %371 = vector.shape_cast %368 : vector<16x128xf32> to vector<1x16x128xf32>
    tpu.vector_store %arg4[%c0_73, %c0_74, %c0_75], %371 {strides = array<i32>} : memref<1x16x128xf32, #tpu.memory_space<vmem>>, vector<1x16x128xf32>,
    return
  }
  func.func @transform_0(%arg0: i32) -> i32 {
    %c0_i32 = arith.constant 0 : i32
    %c0_i32_0 = arith.constant 0 : i32
    return %c0_i32 : i32
  }
  func.func @transform_1(%arg0: i32) -> i32 {
    %c0_i32 = arith.constant 0 : i32
    %c0_i32_0 = arith.constant 0 : i32
    return %c0_i32 : i32
  }
  func.func @transform_2(%arg0: i32) -> (i32, i32, i32) {
    %c0_i32 = arith.constant 0 : i32
    %c0_i32_0 = arith.constant 0 : i32
    %c0_i32_1 = arith.constant 0 : i32
    return %c0_i32, %arg0, %c0_i32_0 : i32, i32, i32
  }
  func.func @transform_3(%arg0: i32) -> (i32, i32, i32) {
    %c0_i32 = arith.constant 0 : i32
    %c0_i32_0 = arith.constant 0 : i32
    %c0_i32_1 = arith.constant 0 : i32
    return %c0_i32, %arg0, %c0_i32_0 : i32, i32, i32
  }
}

</mosaic_0001>

<bundles_post_ra>
// kernel: tpu_custom_call.1
= control target key start
LH: loop header
LB: loop body
LE: loop exit
PB: predicated region body
PF: predicated region fallthrough
CT: control target
= control target key end

     0   :  { %8 = vsyncpa [#allocation5], 0  ;;  %s1704_s0 = inlined_call_operand.hbm [shape: f32[45], index: 0, kind: input, shape index: {}]   ;;  %s1705_s1 = inlined_call_operand.vmem [shape: f32[15], index: 1, kind: input, shape index: {}]   ;;  %s1706_s2 = inlined_call_operand.hbm [shape: f32[3,48,128], index: 2, kind: input, shape index: {}]   ;;  %s1707_s3 = inlined_call_operand.hbm [shape: f32[1,48,128], index: 3, kind: output, shape index: {}]  }
   0x1   :  { %9 = vsyncpa [#allocation6], 0 }
   0x2   :  { %10 = vsyncpa [#allocation3], 0 }
   0x3   :  { %12 = vsyncpa [#allocation3 + $0x1], 0 }
   0x4   :  { %13 = vsyncpa [#allocation4], 0 }
   0x5   :  { %15 = vsyncpa [#allocation4 + $0x1], 0  ;;  %s1220_s12 = smov 0   ;;  %s1222_s13 = smov 0  }
   0x6   :  { %s1224_s14 = smov 0   ;;  %s1226_s15 = smov 0  }
   0x7 LB: > { %s1241_s16 = sadd.s32 4294967295, %s1187_s15   ;;  %s880_s17 = sadd.s32 4294967294, %s1187_s15   ;;  %s1187_s15 = sphi %s1226_s15, %s1727_s15   ;;  %s1183_s14 = sphi %s1224_s14, %s1726_s14   ;;  %s1179_s13 = sphi %s1222_s13, %s1725_s13   ;;  %s1175_s12 = sphi %s1220_s12, %s1724_s12  }
   0x8   : > { %s1245_s18 = sadd.s32 1, %s1187_s15   ;;  %s70_s19 = sadd.s32 1, %s1183_s14 }
   0x9   : > { %s67_s20 = ssub.s32 %s1187_s15, %s1245_s18  ;;  %p77_p0 = scmp.ne.s32.totalorder %s1183_s14, %s1179_s13 }
   0xa   : > { %p68_p1 = scmp.eq.s32.totalorder %s67_s20, 0  ;;  %p78_p2 = scmp.eq.s32.totalorder %s1187_s15, 0 }
   0xb   : > { %p83_p3 = scmp.ne.s32.totalorder %s1179_s13, %s1175_s12  ;;  %p1708_p4 = scmp.eq.s32.totalorder %s1241_s16, 0 }
   0xc   : > { %s1257_s21 = scalar_select %p68_p1, %s1183_s14, %s70_s19  }
   0xd   : > { %p1259_p5 = por %p78_p2, %p77_p0  ;;  %p1265_p6 = por %p1708_p4, %p83_p3 }
   0xe   : > { %p107_p7 = scmp.eq.s32.totalorder %s1241_s16, 2  ;;  %p113_p8 = scmp.eq.s32.totalorder %s880_s17, 2 }
   0xf   : > { %s1712_s23 = scalar_select %p1265_p6, 1, 0 }
  0x10   : > { %p881_p9 = scmp.ge.s32.totalorder %s1187_s15, 1  ;;  %p120_p10 = scmp.lt.s32.totalorder %s1187_s15, 4 }
  0x11   : > { %p1272_p11 = por %p107_p7, %p77_p0  ;;  %p1276_p12 = por %p113_p8, %p83_p3 }
  0x12   : > { %p1280_p13 = pnand %p881_p9, %p120_p10  ;;  %s142_s29 = sshll.u32 %s1705_s1, 4  ;;  %s143_s29 = int_to_ptr.vmem [resolvable:$true] %s142_s29 }
  0x13   : > { %s1713_s24 = scalar_select %p1272_p11, 1, 0 }
  0x14   : > { %s1714_s25 = scalar_select %p1276_p12, 1, 0 }
  0x15   : > { %p975_p1 = pneg %p1280_p13  ;;  %s1085_s6 = scalar_lea.hbm %s1704_s0, 16 }
  0x16   : > { %p1086_p2 = scmp.ne.s32.totalorder %s1704_s0, %s1085_s6  ;;  %p1092_p9 = scmp.lt.u32.totalorder %s1085_s6, %s1704_s0 }
  0x17   : > { %p1291_p0 = pnand %p975_p1, %p1708_p4 }
  0x19   : > { %p1087_p3 = pneg %p1291_p0 }
  0x1b   : > { %p1088_p7 = pnand %p1087_p3, %p1086_p2 }
  0x1d   : > { %p1089_p8 = pneg %p1088_p7 }
  0x1f   : > { %p1094_p10 = pnand %p1092_p9, %p1089_p8 }
  0x21   : > { %1097 = shalt.err (!%p1094_p10)
}
  0x22   : > { %s1189_s11 = smov [#allocation2]   ;;  %s1098_s20 = scalar_lea.vmem %s143_s29, 16 }
  0x23   : > { %978 = dma.hbm_to_smem (!%p1291_p0), %s1704_s0, 16, %s1189_s11, [#allocation5]  }
  0x24   : > { %p1099_p1 = scmp.ne.s32.totalorder %s143_s29, %s1098_s20  ;;  %p1106_p11 = scmp.lt.s32.totalorder %s143_s29, %s143_s29 }
  0x25   : > { %p1107_p2 = scmp.lt.s32.totalorder %s1098_s20, %s1098_s20 }
  0x26   : > { %p1101_p4 = pnand %p1099_p1, %p1087_p3 }
  0x27   : > { %p1108_p7 = por %p1107_p2, %p1106_p11 }
  0x28   : > { %p1102_p12 = pneg %p1101_p4 }
  0x2a   : > { %p1109_p6 = pnand %p1108_p7, %p1102_p12 }
  0x2c   : > { %1112 = shalt.err (!%p1109_p6)
}
  0x2d   : > { %s1190_s27 = smov [#allocation7]   ;;  %p884_p8 = scmp.ge.s32.totalorder %s1187_s15, 3 }
  0x2e   : > { %981 = dma.vmem_to_smem (!%p1291_p0), %s143_s29, 16, %s1190_s27, [#allocation6]  }
  0x2f   : > { %149 = sbr.rel (%p884_p8) target bundleno = 68 (0x44), region = 24 }
  0x36   : > { %s153_s28 = sand.u32 1, %s1183_s14   ;;  %s952_s5 = sshll.u32 %s1187_s15, 8 }
  0x37   : > { %s954_s4 = smul.u32 48, %s153_s28  ;;  %s1191_s6 = smov 768  }
  0x38   : > { %961 = sst [smem:[#allocation11]] (%p1259_p5), %s1191_s6  ;;  %s163_s8 = scalar_lea.hbm %s1706_s2, %s952_s5 }
  0x39   : > { %s960_s29 = scalar_select %p1259_p5, [#allocation0], [#allocation12] }
  0x3a   : > { %s157_s10 = scalar_lea.vmem [#allocation8], %s954_s4  ;;  %s1192_s17 = smov 256  }
  0x3b   : > { %s168_s9 = sld [smem:[%s960_s29]]   ;;  %s176_s11 = sshll.u32 %s157_s10, 4  ;;  %s177_s11 = int_to_ptr.vmem [resolvable:$true] %s176_s11 }
  0x3c   : > { %962 = sst [smem:[#allocation11 + $0x1]] (%p1259_p5), %s1192_s17  ;;  %s1193_s19 = smov 2  }
  0x3d   : > { %963 = sst [smem:[#allocation11 + $0x2]] (%p1259_p5), %s1193_s19  ;;  %s1194_s20 = smov 128  }
  0x3e   : > { %964 = sst [smem:[#allocation11 + $0x3]] (%p1259_p5), %s1194_s20  ;;  %s1195_s27 = smov 8  }
  0x3f   : > { %965 = sst [smem:[#allocation11 + $0x4]] (%p1259_p5), %s1194_s20  ;;  %s154_s4 = scalar_lea.sflag [#allocation3], %s153_s28 }
  0x40   : > { %966 = sst [smem:[#allocation11 + $0x5]] (%p1259_p5), %s1195_s27  ;;  %s1196_s29 = smov [#allocation10]  }
  0x41   : > { %s887_s5 = sshll.u32 %s168_s9, 26 }
  0x42   : > { %s888_s6 = sadd.s32 134217728, %s887_s5 }
  0x43   : > { %967 = dma.general (%p1259_p5), %s163_s8, 768, %s177_s11, %s154_s4, %s1196_s29, [#allocation11], %s888_s6, 0  }
  0x44 PF: > { %201 = sbr.rel (%p1280_p13) target bundleno = 297 (0x129), region = 32  ;;  %p1717_p4 = scmp.eq.s32.totalorder (!%p1280_p13), %s1241_s16, 0 }
  0x4b   : > { %1158 = dma.done.wait (%p1717_p4), [#allocation5], 16   ;;  %p1718_p6 = pmov %p1717_p4 }
  0x4c   : > { %p1719_p11 = pmov %p1717_p4 }
  0x4d   : > { %1160 = vsyncadd (%p1718_p6), [#allocation5], 4294967280 }
  0x4e   : > { %1162 = dma.done.wait (%p1719_p11), [#allocation6], 16   ;;  %p1720_p12 = pmov %p1717_p4 }
  0x4f   : > { %s1346_s22 = sand.u32 1, %s1179_s13   ;;  %p1721_p5 = scmp.ne.s32.totalorder %s1712_s23, 0 }
  0x50   : > { %1164 = vsyncadd (%p1720_p12), [#allocation6], 4294967280  ;;  %s955_s26 = smul.u32 48, %s1346_s22  ;;  %s212_s28 = scalar_lea.sflag [#allocation3], %s1346_s22 }
  0x52   : > { %s215_s30 = scalar_lea.vmem [#allocation8], %s955_s26 }
  0x53   : > { %1166 = dma.done.wait (%p1721_p5), %s212_s28, 768  }
  0x54   : > { %1168 = vsyncadd (%p1721_p5), %s212_s28, 4294966528 }
  0x55   : > { %220 = sfence }
  0x56   : > { %s249_s7 = sld [smem:[#allocation2]]  ;;  %s897_s8 = sld [smem:[#allocation2 + $0x1]]  ;;  %v1356_v0 = vld [vmem:[%s215_s30] sm:$0xff]  ;;  %v1358_v1 = vld [vmem:[%s215_s30 + $0x8] sm:$0xff]  ;;  %v1364_v2 = vld [vmem:[%s215_s30 + $0x10] sm:$0xff] }
  0x57   : > { %s898_s9 = sld [smem:[#allocation2 + $0x2]]  ;;  %s1354_s10 = sld [smem:[#allocation7]]  ;;  %v1366_v3 = vld [vmem:[%s215_s30 + $0x18] sm:$0xff]  ;;  %v1372_v4 = vld [vmem:[%s215_s30 + $0x20] sm:$0xff]  ;;  %v1374_v5 = vld [vmem:[%s215_s30 + $0x28] sm:$0xff] }
  0x58   : > { %s899_s11 = sld [smem:[#allocation2 + $0x3]]  ;;  %s900_s17 = sld [smem:[#allocation2 + $0x4]] }
  0x59   : > { %s1360_s19 = sld [smem:[#allocation2 + $0x5]]  ;;  %s1362_s20 = sld [smem:[#allocation7 + $0x1]] }
  0x5a   : > { %s1368_s23 = sld [smem:[#allocation2 + $0x6]]  ;;  %s1370_s27 = sld [smem:[#allocation2 + $0x7]] }
  0x5b   : > { %s1385_s5 = sld [smem:[#allocation2 + $0x8]]  ;;  %s1395_s6 = sld [smem:[#allocation7 + $0x2]] }
  0x5c   : > { %v250_v6 = vstv %s249_s7  ;;  %v254_v9 = vstv %s897_s8  ;;  %s1405_s4 = sld [smem:[#allocation2 + $0x9]]  ;;  %s1407_s29 = sld [smem:[#allocation2 + $0xa]] }
  0x5d   : > { %v251_v7 = vmul.f32 %v250_v6, %v1356_v0  ;;  %v252_v8 = vmul.f32 %v250_v6, %v1358_v1  ;;  %v255_v10 = vmul.f32 %v1364_v2, %v254_v9  ;;  %v256_v11 = vmul.f32 %v1366_v3, %v254_v9  ;;  %s1409_s26 = sld [smem:[#allocation2 + $0xc]]  ;;  %s1411_s28 = sld [smem:[#allocation2 + $0xf]] }
  0x5e   : > { %v260_v12 = vstv %s898_s9  ;;  %v266_v13 = vstv %s1354_s10  ;;  %v288_v16 = vstv %s899_s11  ;;  %v292_v17 = vstv %s900_s17  ;;  %s1413_s30 = sld [smem:[#allocation2 + $0xd]]  ;;  %s1415_s7 = sld [smem:[#allocation2 + $0x10]] }
  0x5f   : > { %v261_v14 = vmul.f32 %v1372_v4, %v260_v12  ;;  %v262_v15 = vmul.f32 %v1374_v5, %v260_v12  ;;  %v257_v18 = vadd.f32 %v255_v10, %v251_v7  ;;  %v258_v19 = vadd.f32 %v256_v11, %v252_v8  ;;  %s1420_s8 = sld [smem:[#allocation2 + $0xb]]  ;;  %s1427_s9 = sld [smem:[#allocation2 + $0xe]] }
  0x60   : > { %v289_v20 = vmul.f32 %v288_v16, %v1356_v0  ;;  %v290_v21 = vmul.f32 %v288_v16, %v1358_v1  ;;  %v293_v22 = vmul.f32 %v1364_v2, %v292_v17  ;;  %v294_v23 = vmul.f32 %v1366_v3, %v292_v17  ;;  %s1429_s10 = sld [smem:[#allocation2 + $0x11]]  ;;  %s1442_s11 = sld [smem:[#allocation7 + $0x3]] }
  0x61   : > { %v298_v24 = vstv %s1360_s19  ;;  %v304_v25 = vstv %s1362_s20  ;;  %v263_v26 = vadd.f32 %v261_v14, %v257_v18  ;;  %v264_v27 = vadd.f32 %v262_v15, %v258_v19  ;;  %s1447_s17 = sld [smem:[#allocation7 + $0x4]]  ;;  %s1454_s19 = sld [smem:[#allocation7 + $0x5]] }
  0x62   : > { %v299_v28 = vmul.f32 %v1372_v4, %v298_v24  ;;  %v300_v29 = vmul.f32 %v1374_v5, %v298_v24  ;;  %v295_v30 = vadd.f32 %v293_v22, %v289_v20  ;;  %v296_v31 = vadd.f32 %v294_v23, %v290_v21  ;;  %s1489_s20 = sld [smem:[#allocation2 + $0x12]]  ;;  %p1722_p0 = scmp.ne.s32.totalorder %s1713_s24, 0 }
  0x63   : > { %v326_v32 = vstv %s1368_s23  ;;  %v330_v33 = vstv %s1370_s27  ;;  %v267_v34 = vadd.f32 %v266_v13, %v263_v26  ;;  %v268_v35 = vadd.f32 %v266_v13, %v264_v27  ;;  %s1491_s23 = sld [smem:[#allocation2 + $0x13]]  ;;  %s1493_s27 = sld [smem:[#allocation2 + $0x14]] }
  0x64   : > { %v327_v36 = vmul.f32 %v326_v32, %v1356_v0  ;;  %v328_v37 = vmul.f32 %v326_v32, %v1358_v1  ;;  %v301_v38 = vadd.f32 %v299_v28, %v295_v30  ;;  %v302_v39 = vadd.f32 %v300_v29, %v296_v31 }
  0x65   : > { %v331_v40 = vmul.f32 %v1364_v2, %v330_v33  ;;  %v332_v41 = vmul.f32 %v1366_v3, %v330_v33  ;;  %v271_v42 = vmul.f32 %v267_v34, %v267_v34  ;;  %v272_v43 = vmul.f32 %v268_v35, %v268_v35 }
  0x66   : > { %v305_v44 = vadd.f32 %v304_v25, %v301_v38  ;;  %v306_v45 = vadd.f32 %v304_v25, %v302_v39  ;;  %v336_v50 = vstv %s1385_s5  ;;  %v342_v59 = vstv %s1395_s6  ;;  %s1495_s5 = sld [smem:[#allocation7 + $0x6]]  ;;  %s1497_s6 = sld [smem:[#allocation2 + $0x15]] }
  0x67   : > { %v333_v46 = vadd.f32 %v331_v40, %v327_v36  ;;  %v273_v47 = vmul.f32 %v271_v42, %v267_v34  ;;  %v274_v48 = vmul.f32 %v272_v43, %v268_v35  ;;  %v334_v49 = vadd.f32 %v332_v41, %v328_v37 }
  0x68   : > { %v309_v51 = vmul.f32 %v305_v44, %v305_v44  ;;  %v310_v52 = vmul.f32 %v306_v45, %v306_v45  ;;  %v337_v55 = vmul.f32 %v1372_v4, %v336_v50  ;;  %v338_v56 = vmul.f32 %v1374_v5, %v336_v50 }
  0x69   : > { %v275_v53 = vmul.f32 0.044715, %v273_v47  ;;  %v276_v54 = vmul.f32 0.044715, %v274_v48  ;;  %v269_v25 = vmul.f32 0.5, %v267_v34  ;;  %v270_v28 = vmul.f32 0.5, %v268_v35 }
  0x6a   : > { %v311_v57 = vmul.f32 %v309_v51, %v305_v44  ;;  %v312_v58 = vmul.f32 %v310_v52, %v306_v45  ;;  %v339_v62 = vadd.f32 %v337_v55, %v333_v46  ;;  %v340_v63 = vadd.f32 %v338_v56, %v334_v49 }
  0x6b   : > { %v277_v60 = vadd.f32 %v275_v53, %v267_v34  ;;  %v278_v61 = vadd.f32 %v276_v54, %v268_v35  ;;  %v307_v32 = vmul.f32 0.5, %v305_v44  ;;  %v308_v36 = vmul.f32 0.5, %v306_v45 }
  0x6c   : > { %v313_v6 = vmul.f32 0.044715, %v311_v57  ;;  %v314_v7 = vmul.f32 0.044715, %v312_v58  ;;  %v343_v10 = vadd.f32 %v342_v59, %v339_v62  ;;  %v344_v11 = vadd.f32 %v342_v59, %v340_v63 }
  0x6d   : > { %v279_v8 = vmul.f32 0.7978846, %v277_v60  ;;  %v280_v9 = vmul.f32 0.7978846, %v278_v61  ;;  %v370_v43 = vstv %s1405_s4  ;;  %v374_v46 = vstv %s1407_s29  ;;  %s1499_s4 = sld [smem:[#allocation2 + $0x16]]  ;;  %s1501_s29 = sld [smem:[#allocation2 + $0x17]] }
  0x6e   : > { %v315_v12 = vadd.f32 %v313_v6, %v305_v44  ;;  %v316_v13 = vadd.f32 %v314_v7, %v306_v45  ;;  %v347_v14 = vmul.f32 %v343_v10, %v343_v10  ;;  %v348_v17 = vmul.f32 %v344_v11, %v344_v11 }
  0x6f   : > { %1033 = vtanh.f32 %v279_v8  ;;  %v408_v44 = vstv %s1409_s26  ;;  %v446_v47 = vstv %s1411_s28  ;;  %v345_v48 = vmul.f32 0.5, %v343_v10  ;;  %s1503_s26 = sld [smem:[#allocation7 + $0x7]]  ;;  %s1505_s28 = sld [smem:[#allocation2 + $0x18]] }
  0x70   : > { %1035 = vtanh.f32 %v280_v9  ;;  %v317_v15 = vmul.f32 0.7978846, %v315_v12  ;;  %v318_v16 = vmul.f32 0.7978846, %v316_v13  ;;  %v349_v18 = vmul.f32 %v347_v14, %v343_v10 }
  0x71   : > { %v350_v19 = vmul.f32 %v348_v17, %v344_v11  ;;  %v450_v50 = vstv %s1415_s7  ;;  %v346_v51 = vmul.f32 0.5, %v344_v11  ;;  %v456_v12 = vstv %s1429_s10  ;;  %s1509_s7 = sld [smem:[#allocation2 + $0x1a]]  ;;  %s1569_s10 = sld [smem:[#allocation2 + $0x1c]] }
  0x72   : > { %1037 = vtanh.f32 %v317_v15  ;;  %v351_v20 = vmul.f32 0.044715, %v349_v18 }
  0x73   : > { %1039 = vtanh.f32 %v318_v16  ;;  %v352_v21 = vmul.f32 0.044715, %v350_v19 }
  0x74   : > { %v353_v22 = vadd.f32 %v351_v20, %v343_v10  ;;  %v380_v10 = vstv %s1420_s8  ;;  %s1552_s8 = sld [smem:[#allocation7 + $0x8]] }
  0x75   : > { %v354_v23 = vadd.f32 %v352_v21, %v344_v11  ;;  %v418_v11 = vstv %s1427_s9  ;;  %s1567_s9 = sld [smem:[#allocation2 + $0x1b]] }
  0x76   : > { %v355_v24 = vmul.f32 0.7978846, %v353_v22  ;;  %v386_v22 = vstv %s1442_s11  ;;  %s1571_s11 = sld [smem:[#allocation2 + $0x1d]] }
  0x77   : > { %v356_v26 = vmul.f32 0.7978846, %v354_v23 }
  0x78   : > { %1041 = vtanh.f32 %v355_v24 }
  0x79   : > { %v1034_v27 = vpop.eup %1033  ;;  %1043 = vtanh.f32 %v356_v26  ;;  %v424_v26 = vstv %s1447_s17  ;;  %s1573_s17 = sld [smem:[#allocation2 + $0x1e]] }
  0x7a   : > { %v1036_v29 = vpop.eup %1035  ;;  %v283_v30 = vadd.f32 1.0, %v1034_v27 }
  0x7b   : > { %v284_v31 = vadd.f32 1.0, %v1036_v29 }
  0x7c   : > { %v1038_v33 = vpop.eup %1037  ;;  %v285_v34 = vmul.f32 %v283_v30, %v269_v25  ;;  %v462_v30 = vstv %s1454_s19  ;;  %s1575_s19 = sld [smem:[#allocation2 + $0x21]] }
  0x7d   : > { %v1040_v37 = vpop.eup %1039  ;;  %v286_v38 = vmul.f32 %v284_v31, %v270_v28  ;;  %v321_v35 = vadd.f32 1.0, %v1038_v33 }
  0x7e   : > { %v322_v39 = vadd.f32 1.0, %v1040_v37  ;;  %v1418_v40 = vadd.f32 %v285_v34, %v1356_v0  ;;  %v412_v0 = vstv %s1413_s30  ;;  %s1507_s30 = sld [smem:[#allocation2 + $0x19]] }
  0x7f   : > { %v323_v41 = vmul.f32 %v321_v35, %v307_v32  ;;  %v1423_v42 = vadd.f32 %v286_v38, %v1358_v1 }
  0x80   : > { %v324_v45 = vmul.f32 %v322_v39, %v308_v36  ;;  %v371_v1 = vmul.f32 %v370_v43, %v1418_v40  ;;  %v409_v53 = vmul.f32 %v408_v44, %v1418_v40 }
  0x81   : > { %v1434_v49 = vadd.f32 %v1364_v2, %v323_v41  ;;  %v372_v55 = vmul.f32 %v370_v43, %v1423_v42  ;;  %v410_v56 = vmul.f32 %v408_v44, %v1423_v42  ;;  %v447_v2 = vmul.f32 %v446_v47, %v1418_v40 }
  0x82   : > { %v1439_v52 = vadd.f32 %v1366_v3, %v324_v45  ;;  %v1042_v54 = vpop.eup %1041  ;;  %v448_v3 = vmul.f32 %v446_v47, %v1423_v42 }
  0x83   : > { %v1044_v57 = vpop.eup %1043  ;;  %v359_v58 = vadd.f32 1.0, %v1042_v54  ;;  %v375_v59 = vmul.f32 %v374_v46, %v1434_v49  ;;  %v413_v60 = vmul.f32 %v412_v0, %v1434_v49  ;;  %v451_v61 = vmul.f32 %v450_v50, %v1434_v49 }
  0x84   : > { %v360_v62 = vadd.f32 1.0, %v1044_v57  ;;  %v376_v63 = vmul.f32 %v374_v46, %v1439_v52  ;;  %v414_v6 = vmul.f32 %v412_v0, %v1439_v52  ;;  %v452_v7 = vmul.f32 %v450_v50, %v1439_v52 }
  0x85   : > { %v361_v8 = vmul.f32 %v359_v58, %v345_v48  ;;  %v377_v14 = vadd.f32 %v375_v59, %v371_v1  ;;  %v415_v15 = vadd.f32 %v413_v60, %v409_v53  ;;  %v453_v16 = vadd.f32 %v451_v61, %v447_v2 }
  0x86   : > { %v362_v9 = vmul.f32 %v360_v62, %v346_v51  ;;  %v378_v18 = vadd.f32 %v376_v63, %v372_v55  ;;  %v416_v19 = vadd.f32 %v414_v6, %v410_v56  ;;  %v454_v20 = vadd.f32 %v452_v7, %v448_v3 }
  0x87   : > { %v1463_v13 = vadd.f32 %v1372_v4, %v361_v8 }
  0x88   : > { %v1466_v17 = vadd.f32 %v1374_v5, %v362_v9 }
  0x89   : > { %v381_v21 = vmul.f32 %v380_v10, %v1463_v13  ;;  %v419_v23 = vmul.f32 %v418_v11, %v1463_v13  ;;  %v457_v24 = vmul.f32 %v456_v12, %v1463_v13 }
  0x8a   : > { %v382_v4 = vmul.f32 %v380_v10, %v1466_v17  ;;  %v420_v25 = vmul.f32 %v418_v11, %v1466_v17  ;;  %v458_v27 = vmul.f32 %v456_v12, %v1466_v17 }
  0x8b   : > { %v383_v28 = vadd.f32 %v381_v21, %v377_v14  ;;  %v421_v5 = vadd.f32 %v419_v23, %v415_v15  ;;  %v459_v29 = vadd.f32 %v457_v24, %v453_v16  ;;  %v490_v16 = vstv %s1489_s20  ;;  %s1577_s20 = sld [smem:[#allocation2 + $0x1f]] }
  0x8c   : > { %v384_v31 = vadd.f32 %v382_v4, %v378_v18  ;;  %v422_v32 = vadd.f32 %v420_v25, %v416_v19  ;;  %v460_v33 = vadd.f32 %v458_v27, %v454_v20  ;;  %v494_v18 = vstv %s1491_s23  ;;  %s1579_s23 = sld [smem:[#allocation2 + $0x22]] }
  0x8d   : > { %v387_v34 = vadd.f32 %v386_v22, %v383_v28  ;;  %v425_v36 = vadd.f32 %v424_v26, %v421_v5  ;;  %v1477_v35 = vadd.f32 %v462_v30, %v459_v29  ;;  %v500_v19 = vstv %s1493_s27  ;;  %s1584_s27 = sld [smem:[#allocation2 + $0x20]] }
  0x8e   : > { %v388_v37 = vadd.f32 %v386_v22, %v384_v31  ;;  %v426_v38 = vadd.f32 %v424_v26, %v422_v32  ;;  %v1479_v39 = vadd.f32 %v462_v30, %v460_v33  ;;  %v506_v23 = vstv %s1495_s5  ;;  %s1586_s5 = sld [smem:[#allocation2 + $0x23]] }
  0x8f   : > { %v391_v41 = vmul.f32 %v387_v34, %v387_v34  ;;  %v429_v43 = vmul.f32 %v425_v36, %v425_v36  ;;  %v467_v50 = vmul.f32 %v1477_v35, %v1477_v35  ;;  %v389_v12 = vmul.f32 0.5, %v387_v34 }
  0x90   : > { %v392_v44 = vmul.f32 %v388_v37, %v388_v37  ;;  %v430_v45 = vmul.f32 %v426_v38, %v426_v38  ;;  %v468_v51 = vmul.f32 %v1479_v39, %v1479_v39  ;;  %v390_v15 = vmul.f32 0.5, %v388_v37 }
  0x91   : > { %v393_v46 = vmul.f32 %v391_v41, %v387_v34  ;;  %v431_v47 = vmul.f32 %v429_v43, %v425_v36  ;;  %v469_v56 = vmul.f32 %v467_v50, %v1477_v35  ;;  %v427_v22 = vmul.f32 0.5, %v425_v36 }
  0x92   : > { %v394_v48 = vmul.f32 %v392_v44, %v388_v37  ;;  %v432_v0 = vmul.f32 %v430_v45, %v426_v38  ;;  %v470_v2 = vmul.f32 %v468_v51, %v1479_v39  ;;  %v528_v24 = vstv %s1497_s6  ;;  %s1598_s6 = sld [smem:[#allocation7 + $0x9]] }
  0x93   : > { %v395_v1 = vmul.f32 0.044715, %v393_v46  ;;  %v433_v53 = vmul.f32 0.044715, %v431_v47  ;;  %v471_v60 = vmul.f32 0.044715, %v469_v56  ;;  %v532_v27 = vstv %s1499_s4 }
  0x94   : > { %v396_v54 = vmul.f32 0.044715, %v394_v48  ;;  %v434_v55 = vmul.f32 0.044715, %v432_v0  ;;  %v472_v61 = vmul.f32 0.044715, %v470_v2  ;;  %v538_v28 = vstv %s1501_s29 }
  0x95   : > { %v397_v3 = vadd.f32 %v395_v1, %v387_v34  ;;  %v435_v57 = vadd.f32 %v433_v53, %v425_v36  ;;  %v473_v8 = vadd.f32 %v471_v60, %v1477_v35  ;;  %v428_v26 = vmul.f32 0.5, %v426_v38  ;;  %s1605_s4 = sld [smem:[#allocation7 + $0xa]]  ;;  %s1613_s29 = sld [smem:[#allocation7 + $0xb]] }
  0x96   : > { %v398_v58 = vadd.f32 %v396_v54, %v388_v37  ;;  %v436_v59 = vadd.f32 %v434_v55, %v426_v38  ;;  %v474_v9 = vadd.f32 %v472_v61, %v1479_v39  ;;  %v465_v31 = vmul.f32 0.5, %v1477_v35 }
  0x97   : > { %v399_v62 = vmul.f32 0.7978846, %v397_v3  ;;  %v437_v63 = vmul.f32 0.7978846, %v435_v57  ;;  %v475_v10 = vmul.f32 0.7978846, %v473_v8  ;;  %v544_v32 = vstv %s1503_s26 }
  0x98   : > { %v400_v6 = vmul.f32 0.7978846, %v398_v58  ;;  %v438_v7 = vmul.f32 0.7978846, %v436_v59  ;;  %v476_v11 = vmul.f32 0.7978846, %v474_v9  ;;  %v566_v41 = vstv %s1505_s28 }
  0x99   : > { %1045 = vtanh.f32 %v399_v62  ;;  %v466_v36 = vmul.f32 0.5, %v1479_v39  ;;  %v570_v46 = vstv %s1507_s30  ;;  %v576_v35 = vstv %s1509_s7  ;;  %s1639_s26 = sld [smem:[#allocation2 + $0x24]]  ;;  %s1641_s28 = sld [smem:[#allocation2 + $0x25]] }
  0x9a   : > { %1047 = vtanh.f32 %v400_v6  ;;  %s1643_s30 = sld [smem:[#allocation2 + $0x26]]  ;;  %s946_s7 = sld [smem:[#allocation7 + $0xc]] }
  0x9b   : > { %1049 = vtanh.f32 %v437_v63 }
  0x9c   : > { %1051 = vtanh.f32 %v438_v7 }
  0x9d   : > { %1053 = vtanh.f32 %v475_v10 }
  0x9e   : > { %1055 = vtanh.f32 %v476_v11 }
  0xa3   : > { %v1046_v14 = vpop.eup %1045 }
  0xa4   : > { %v1048_v20 = vpop.eup %1047  ;;  %v403_v21 = vadd.f32 1.0, %v1046_v14 }
  0xa5   : > { %v1050_v4 = vpop.eup %1049  ;;  %v404_v25 = vadd.f32 1.0, %v1048_v20 }
  0xa6   : > { %v1052_v5 = vpop.eup %1051  ;;  %v405_v29 = vmul.f32 %v403_v21, %v389_v12  ;;  %v441_v30 = vadd.f32 1.0, %v1050_v4 }
  0xa7   : > { %v1054_v33 = vpop.eup %1053  ;;  %v406_v34 = vmul.f32 %v404_v25, %v390_v15  ;;  %v442_v37 = vadd.f32 1.0, %v1052_v5 }
  0xa8   : > { %v1056_v43 = vpop.eup %1055  ;;  %v443_v44 = vmul.f32 %v441_v30, %v427_v22  ;;  %v479_v45 = vadd.f32 1.0, %v1054_v33  ;;  %v1523_v38 = vadd.f32 %v405_v29, %v1418_v40 }
  0xa9   : > { %v444_v47 = vmul.f32 %v442_v37, %v428_v26  ;;  %v480_v48 = vadd.f32 1.0, %v1056_v43  ;;  %v1527_v0 = vadd.f32 %v406_v34, %v1423_v42 }
  0xaa   : > { %v481_v50 = vmul.f32 %v479_v45, %v465_v31  ;;  %v1531_v51 = vadd.f32 %v443_v44, %v1434_v49  ;;  %v491_v39 = vmul.f32 %v490_v16, %v1523_v38  ;;  %v529_v1 = vmul.f32 %v528_v24, %v1523_v38 }
  0xab   : > { %v482_v53 = vmul.f32 %v480_v48, %v466_v36  ;;  %v1536_v54 = vadd.f32 %v444_v47, %v1439_v52  ;;  %v492_v40 = vmul.f32 %v490_v16, %v1527_v0  ;;  %v530_v55 = vmul.f32 %v528_v24, %v1527_v0 }
  0xac   : > { %v1541_v42 = vadd.f32 %v481_v50, %v1463_v13  ;;  %v495_v56 = vmul.f32 %v494_v18, %v1531_v51  ;;  %v533_v49 = vmul.f32 %v532_v27, %v1531_v51  ;;  %v567_v2 = vmul.f32 %v566_v41, %v1523_v38 }
  0xad   : > { %v1547_v3 = vadd.f32 %v482_v53, %v1466_v17  ;;  %v496_v57 = vmul.f32 %v494_v18, %v1536_v54  ;;  %v534_v52 = vmul.f32 %v532_v27, %v1536_v54  ;;  %v568_v58 = vmul.f32 %v566_v41, %v1527_v0 }
  0xae   : > { %v497_v59 = vadd.f32 %v495_v56, %v491_v39  ;;  %v501_v13 = vmul.f32 %v500_v19, %v1541_v42  ;;  %v535_v60 = vadd.f32 %v533_v49, %v529_v1  ;;  %v539_v61 = vmul.f32 %v538_v28, %v1541_v42 }
  0xaf   : > { %v498_v62 = vadd.f32 %v496_v57, %v492_v40  ;;  %v502_v17 = vmul.f32 %v500_v19, %v1547_v3  ;;  %v536_v63 = vadd.f32 %v534_v52, %v530_v55  ;;  %v540_v6 = vmul.f32 %v538_v28, %v1547_v3 }
  0xb0   : > { %v503_v7 = vadd.f32 %v501_v13, %v497_v59  ;;  %v541_v8 = vadd.f32 %v539_v61, %v535_v60  ;;  %v571_v9 = vmul.f32 %v570_v46, %v1531_v51  ;;  %v572_v10 = vmul.f32 %v570_v46, %v1536_v54 }
  0xb1   : > { %v504_v11 = vadd.f32 %v502_v17, %v498_v62  ;;  %v542_v12 = vadd.f32 %v540_v6, %v536_v63  ;;  %v577_v14 = vmul.f32 %v576_v35, %v1541_v42  ;;  %v578_v15 = vmul.f32 %v576_v35, %v1547_v3 }
  0xb2   : > { %v507_v16 = vadd.f32 %v506_v23, %v503_v7  ;;  %v545_v18 = vadd.f32 %v544_v32, %v541_v8  ;;  %v573_v19 = vadd.f32 %v571_v9, %v567_v2  ;;  %v574_v20 = vadd.f32 %v572_v10, %v568_v58 }
  0xb3   : > { %v508_v21 = vadd.f32 %v506_v23, %v504_v11  ;;  %v546_v22 = vadd.f32 %v544_v32, %v542_v12  ;;  %v582_v27 = vstv %s1552_s8  ;;  %v610_v7 = vstv %s1567_s9  ;;  %s892_s8 = sshll.u32 %s1346_s22, 4  ;;  %s953_s9 = sshll.u32 %s1241_s16, 8 }
  0xb4   : > { %v511_v24 = vmul.f32 %v507_v16, %v507_v16  ;;  %v549_v4 = vmul.f32 %v545_v18, %v545_v18  ;;  %v579_v29 = vadd.f32 %v577_v14, %v573_v19  ;;  %v580_v30 = vadd.f32 %v578_v15, %v574_v20  ;;  %s770_s16 = scalar_lea.sflag [#allocation4], %s1346_s22 }
  0xb5   : > { %v512_v25 = vmul.f32 %v508_v21, %v508_v21  ;;  %v550_v26 = vmul.f32 %v546_v22, %v546_v22  ;;  %v509_v58 = vmul.f32 0.5, %v507_v16  ;;  %v510_v13 = vmul.f32 0.5, %v508_v21 }
  0xb6   : > { %v513_v28 = vmul.f32 %v511_v24, %v507_v16  ;;  %v551_v5 = vmul.f32 %v549_v4, %v545_v18  ;;  %v583_v36 = vadd.f32 %v582_v27, %v579_v29  ;;  %v584_v41 = vadd.f32 %v582_v27, %v580_v30 }
  0xb7   : > { %v514_v31 = vmul.f32 %v512_v25, %v508_v21  ;;  %v552_v33 = vmul.f32 %v550_v26, %v546_v22  ;;  %v547_v62 = vmul.f32 0.5, %v545_v18  ;;  %v548_v6 = vmul.f32 0.5, %v546_v22 }
  0xb8   : > { %v515_v34 = vmul.f32 0.044715, %v513_v28  ;;  %v553_v37 = vmul.f32 0.044715, %v551_v5  ;;  %v587_v47 = vmul.f32 %v583_v36, %v583_v36  ;;  %v588_v48 = vmul.f32 %v584_v41, %v584_v41 }
  0xb9   : > { %v516_v43 = vmul.f32 0.044715, %v514_v31  ;;  %v554_v44 = vmul.f32 0.044715, %v552_v33  ;;  %v614_v11 = vstv %s1569_s10  ;;  %v620_v12 = vstv %s1571_s11  ;;  %s238_s10 = scalar_lea.vmem [#allocation9], %s892_s8 }
  0xba   : > { %v517_v45 = vadd.f32 %v515_v34, %v507_v16  ;;  %v555_v23 = vadd.f32 %v553_v37, %v545_v18  ;;  %v589_v53 = vmul.f32 %v587_v47, %v583_v36  ;;  %v590_v40 = vmul.f32 %v588_v48, %v584_v41  ;;  %s783_s11 = sshll.u32 %s238_s10, 4  ;;  %s1661_s11 = int_to_ptr.vmem [resolvable:$true] %s783_s11 }
  0xbb   : > { %v518_v32 = vadd.f32 %v516_v43, %v508_v21  ;;  %v556_v46 = vadd.f32 %v554_v44, %v546_v22  ;;  %v648_v16 = vstv %s1573_s17  ;;  %v686_v19 = vstv %s1575_s19 }
  0xbc   : > { %v519_v35 = vmul.f32 0.7978846, %v517_v45  ;;  %v557_v50 = vmul.f32 0.7978846, %v555_v23  ;;  %v591_v55 = vmul.f32 0.044715, %v589_v53  ;;  %v652_v21 = vstv %s1577_s20  ;;  %s1659_s20 = scalar_lea.hbm %s1707_s3, %s953_s9 }
  0xbd   : > { %v520_v39 = vmul.f32 0.7978846, %v518_v32  ;;  %v558_v1 = vmul.f32 0.7978846, %v556_v46  ;;  %v592_v56 = vmul.f32 0.044715, %v590_v40  ;;  %v690_v22 = vstv %s1579_s23 }
  0xbe   : > { %1057 = vtanh.f32 %v519_v35  ;;  %v593_v49 = vadd.f32 %v591_v55, %v583_v36  ;;  %v585_v4 = vmul.f32 0.5, %v583_v36  ;;  %v586_v25 = vmul.f32 0.5, %v584_v41  ;;  %s1113_s23 = scalar_lea.vmem %s1661_s11, 256 }
  0xbf   : > { %1059 = vtanh.f32 %v520_v39  ;;  %v594_v2 = vadd.f32 %v592_v56, %v584_v41  ;;  %v658_v32 = vstv %s1584_s27  ;;  %v696_v47 = vstv %s1586_s5  ;;  %p1114_p13 = scmp.ne.s32.totalorder %s1661_s11, %s1113_s23  ;;  %s1197_s27 = smov [#allocation9]  }
  0xc0   : > { %1061 = vtanh.f32 %v557_v50  ;;  %v595_v57 = vmul.f32 0.7978846, %v593_v49  ;;  %v626_v49 = vstv %s1598_s6  ;;  %s1117_s5 = sshll.u32 %s1197_s27, 4  ;;  %s1118_s5 = int_to_ptr.vmem [resolvable:$false] %s1117_s5 }
  0xc1   : > { %1063 = vtanh.f32 %v558_v1  ;;  %v596_v52 = vmul.f32 0.7978846, %v594_v2  ;;  %p1115_p3 = pnand %p1114_p13, %p1722_p0  ;;  %s1119_s6 = scalar_lea.vmem %s1118_s5, 512 }
  0xc2   : > { %1065 = vtanh.f32 %v595_v57  ;;  %p1120_p10 = scmp.lt.s32.totalorder %s1661_s11, %s1118_s5  ;;  %p1121_p1 = scmp.lt.s32.totalorder %s1119_s6, %s1113_s23 }
  0xc3   : > { %1067 = vtanh.f32 %v596_v52  ;;  %p1116_p9 = pneg %p1115_p3 }
  0xc4   : > { %p1122_p2 = por %p1121_p1, %p1120_p10 }
  0xc6   : > { %p1123_p7 = pnand %p1122_p2, %p1116_p9 }
  0xc8   : > { %v1058_v59 = vpop.eup %1057 }
  0xc9   : > { %v1060_v60 = vpop.eup %1059  ;;  %v523_v61 = vadd.f32 1.0, %v1058_v59 }
  0xca   : > { %v1062_v17 = vpop.eup %1061  ;;  %v524_v63 = vadd.f32 1.0, %v1060_v60 }
  0xcb   : > { %v1064_v8 = vpop.eup %1063  ;;  %v525_v9 = vmul.f32 %v523_v61, %v509_v58  ;;  %v561_v10 = vadd.f32 1.0, %v1062_v17  ;;  %v664_v58 = vstv %s1605_s4  ;;  %v702_v61 = vstv %s1613_s29 }
  0xcc   : > { %v526_v14 = vmul.f32 %v524_v63, %v510_v13  ;;  %v562_v15 = vadd.f32 1.0, %v1064_v8  ;;  %v1066_v27 = vpop.eup %1065 }
  0xcd   : > { %v563_v18 = vmul.f32 %v561_v10, %v547_v62  ;;  %v1591_v20 = vadd.f32 %v525_v9, %v1523_v38  ;;  %v1068_v30 = vpop.eup %1067  ;;  %v599_v31 = vadd.f32 1.0, %v1066_v27 }
  0xce   : > { %v564_v24 = vmul.f32 %v562_v15, %v548_v6  ;;  %v1596_v26 = vadd.f32 %v526_v14, %v1527_v0  ;;  %v600_v34 = vadd.f32 1.0, %v1068_v30 }
  0xcf   : > { %v1601_v28 = vadd.f32 %v563_v18, %v1531_v51  ;;  %v611_v5 = vmul.f32 %v610_v7, %v1591_v20  ;;  %v649_v29 = vmul.f32 %v648_v16, %v1591_v20  ;;  %v687_v38 = vmul.f32 %v686_v19, %v1591_v20 }
  0xd0   : > { %v1609_v0 = vadd.f32 %v564_v24, %v1536_v54  ;;  %v612_v33 = vmul.f32 %v610_v7, %v1596_v26  ;;  %v650_v51 = vmul.f32 %v648_v16, %v1596_v26  ;;  %v688_v41 = vmul.f32 %v686_v19, %v1596_v26 }
  0xd1   : > { %v615_v37 = vmul.f32 %v614_v11, %v1601_v28  ;;  %v653_v36 = vmul.f32 %v652_v21, %v1601_v28  ;;  %v601_v43 = vmul.f32 %v599_v31, %v585_v4  ;;  %v691_v45 = vmul.f32 %v690_v22, %v1601_v28 }
  0xd2   : > { %v616_v44 = vmul.f32 %v614_v11, %v1609_v0  ;;  %v654_v54 = vmul.f32 %v652_v21, %v1609_v0  ;;  %v602_v23 = vmul.f32 %v600_v34, %v586_v25  ;;  %v692_v46 = vmul.f32 %v690_v22, %v1609_v0 }
  0xd3   : > { %v1625_v48 = vadd.f32 %v601_v43, %v1541_v42  ;;  %v617_v35 = vadd.f32 %v615_v37, %v611_v5  ;;  %v655_v50 = vadd.f32 %v653_v36, %v649_v29  ;;  %v693_v39 = vadd.f32 %v691_v45, %v687_v38 }
  0xd4   : > { %v1628_v1 = vadd.f32 %v602_v23, %v1547_v3  ;;  %v618_v53 = vadd.f32 %v616_v44, %v612_v33  ;;  %v656_v40 = vadd.f32 %v654_v54, %v650_v51  ;;  %v694_v55 = vadd.f32 %v692_v46, %v688_v41 }
  0xd5   : > { %v621_v56 = vmul.f32 %v620_v12, %v1625_v48  ;;  %v659_v2 = vmul.f32 %v658_v32, %v1625_v48  ;;  %v697_v57 = vmul.f32 %v696_v47, %v1625_v48 }
  0xd6   : > { %v622_v42 = vmul.f32 %v620_v12, %v1628_v1  ;;  %v660_v52 = vmul.f32 %v658_v32, %v1628_v1  ;;  %v698_v59 = vmul.f32 %v696_v47, %v1628_v1 }
  0xd7   : > { %v623_v13 = vadd.f32 %v621_v56, %v617_v35  ;;  %v661_v3 = vadd.f32 %v659_v2, %v655_v50  ;;  %v699_v60 = vadd.f32 %v697_v57, %v693_v39 }
  0xd8   : > { %v624_v62 = vadd.f32 %v622_v42, %v618_v53  ;;  %v662_v17 = vadd.f32 %v660_v52, %v656_v40  ;;  %v700_v63 = vadd.f32 %v698_v59, %v694_v55 }
  0xd9   : > { %v627_v6 = vadd.f32 %v626_v49, %v623_v13  ;;  %v665_v7 = vadd.f32 %v664_v58, %v661_v3  ;;  %v703_v10 = vadd.f32 %v702_v61, %v699_v60  ;;  %v730_v60 = vstv %s1639_s26 }
  0xda   : > { %v628_v8 = vadd.f32 %v626_v49, %v624_v62  ;;  %v666_v9 = vadd.f32 %v664_v58, %v662_v17  ;;  %v704_v11 = vadd.f32 %v702_v61, %v700_v63 }
  0xdb   : > { %v631_v14 = vmul.f32 %v627_v6, %v627_v6  ;;  %v669_v12 = vmul.f32 %v665_v7, %v665_v7  ;;  %v707_v24 = vmul.f32 %v703_v10, %v703_v10  ;;  %v629_v47 = vmul.f32 0.5, %v627_v6 }
  0xdc   : > { %v632_v15 = vmul.f32 %v628_v8, %v628_v8  ;;  %v670_v16 = vmul.f32 %v666_v9, %v666_v9  ;;  %v708_v4 = vmul.f32 %v704_v11, %v704_v11  ;;  %v630_v50 = vmul.f32 0.5, %v628_v8 }
  0xdd   : > { %v633_v19 = vmul.f32 %v631_v14, %v627_v6  ;;  %v671_v18 = vmul.f32 %v669_v12, %v665_v7  ;;  %v709_v38 = vmul.f32 %v707_v24, %v703_v10  ;;  %v667_v40 = vmul.f32 0.5, %v665_v7 }
  0xde   : > { %v634_v21 = vmul.f32 %v632_v15, %v628_v8  ;;  %v672_v22 = vmul.f32 %v670_v16, %v666_v9  ;;  %v710_v30 = vmul.f32 %v708_v4, %v704_v11  ;;  %v668_v49 = vmul.f32 0.5, %v666_v9 }
  0xdf   : > { %v635_v25 = vmul.f32 0.044715, %v633_v19  ;;  %v673_v27 = vmul.f32 0.044715, %v671_v18  ;;  %v711_v37 = vmul.f32 0.044715, %v709_v38  ;;  %v740_v19 = vstv %s1643_s30 }
  0xe0   : > { %v636_v5 = vmul.f32 0.044715, %v634_v21  ;;  %v674_v29 = vmul.f32 0.044715, %v672_v22  ;;  %v712_v36 = vmul.f32 0.044715, %v710_v30 }
  0xe1   : > { %v637_v31 = vadd.f32 %v635_v25, %v627_v6  ;;  %v675_v33 = vadd.f32 %v673_v27, %v665_v7  ;;  %v713_v45 = vadd.f32 %v711_v37, %v703_v10  ;;  %v705_v52 = vmul.f32 0.5, %v703_v10 }
  0xe2   : > { %v638_v51 = vadd.f32 %v636_v5, %v628_v8  ;;  %v676_v34 = vadd.f32 %v674_v29, %v666_v9  ;;  %v714_v23 = vadd.f32 %v712_v36, %v704_v11  ;;  %v706_v3 = vmul.f32 0.5, %v704_v11 }
  0xe3   : > { %v639_v41 = vmul.f32 0.7978846, %v637_v31  ;;  %v677_v43 = vmul.f32 0.7978846, %v675_v33  ;;  %v715_v32 = vmul.f32 0.7978846, %v713_v45  ;;  %v734_v9 = vstv %s1641_s28 }
  0xe4   : > { %v640_v44 = vmul.f32 0.7978846, %v638_v51  ;;  %v678_v54 = vmul.f32 0.7978846, %v676_v34  ;;  %v716_v46 = vmul.f32 0.7978846, %v714_v23  ;;  %v746_v27 = vstv %s946_s7 }
  0xe5   : > { %1069 = vtanh.f32 %v639_v41 }
  0xe6   : > { %1071 = vtanh.f32 %v640_v44 }
  0xe7   : > { %1073 = vtanh.f32 %v677_v43 }
  0xe8   : > { %1075 = vtanh.f32 %v678_v54 }
  0xe9   : > { %1077 = vtanh.f32 %v715_v32 }
  0xea   : > { %1079 = vtanh.f32 %v716_v46 }
  0xef   : > { %v1070_v35 = vpop.eup %1069 }
  0xf0   : > { %v1072_v39 = vpop.eup %1071  ;;  %v643_v53 = vadd.f32 1.0, %v1070_v35 }
  0xf1   : > { %v1074_v55 = vpop.eup %1073  ;;  %v644_v56 = vadd.f32 1.0, %v1072_v39 }
  0xf2   : > { %v1076_v2 = vpop.eup %1075  ;;  %v645_v57 = vmul.f32 %v643_v53, %v629_v47  ;;  %v681_v42 = vadd.f32 1.0, %v1074_v55 }
  0xf3   : > { %v1078_v58 = vpop.eup %1077  ;;  %v646_v59 = vmul.f32 %v644_v56, %v630_v50  ;;  %v682_v13 = vadd.f32 1.0, %v1076_v2 }
  0xf4   : > { %v1080_v61 = vpop.eup %1079  ;;  %v683_v62 = vmul.f32 %v681_v42, %v667_v40  ;;  %v719_v17 = vadd.f32 1.0, %v1078_v58  ;;  %v723_v63 = vadd.f32 %v645_v57, %v1591_v20 }
  0xf5   : > { %v684_v6 = vmul.f32 %v682_v13, %v668_v49  ;;  %v720_v7 = vadd.f32 1.0, %v1080_v61  ;;  %v724_v8 = vadd.f32 %v646_v59, %v1596_v26 }
  0xf6   : > { %v721_v14 = vmul.f32 %v719_v17, %v705_v52  ;;  %v725_v10 = vadd.f32 %v683_v62, %v1601_v28  ;;  %v731_v12 = vmul.f32 %v730_v60, %v723_v63 }
  0xf7   : > { %v722_v15 = vmul.f32 %v720_v7, %v706_v3  ;;  %v726_v11 = vadd.f32 %v684_v6, %v1609_v0  ;;  %v732_v16 = vmul.f32 %v730_v60, %v724_v8 }
  0xf8   : > { %v727_v18 = vadd.f32 %v721_v14, %v1625_v48  ;;  %v735_v21 = vmul.f32 %v734_v9, %v725_v10 }
  0xf9   : > { %v728_v22 = vadd.f32 %v722_v15, %v1628_v1  ;;  %v736_v20 = vmul.f32 %v734_v9, %v726_v11 }
  0xfa   : > { %v737_v24 = vadd.f32 %v735_v21, %v731_v12  ;;  %v741_v4 = vmul.f32 %v740_v19, %v727_v18 }
  0xfb   : > { %v738_v25 = vadd.f32 %v736_v20, %v732_v16  ;;  %v742_v26 = vmul.f32 %v740_v19, %v728_v22 }
  0xfc   : > { %v743_v5 = vadd.f32 %v741_v4, %v737_v24 }
  0xfd   : > { %v744_v28 = vadd.f32 %v742_v26, %v738_v25 }
  0xfe   : > { %v747_v29 = vadd.f32 %v746_v27, %v743_v5 }
  0xff   : > { %v748_v38 = vadd.f32 %v746_v27, %v744_v28 }
 0x100   : > { %v751_v30 = vmul.f32 %v747_v29, %v747_v29  ;;  %v749_v41 = vmul.f32 0.5, %v747_v29 }
 0x101   : > { %v752_v0 = vmul.f32 %v748_v38, %v748_v38  ;;  %v750_v44 = vmul.f32 0.5, %v748_v38 }
 0x102   : > { %v753_v31 = vmul.f32 %v751_v30, %v747_v29 }
 0x103   : > { %v754_v33 = vmul.f32 %v752_v0, %v748_v38 }
 0x104   : > { %v755_v48 = vmul.f32 0.044715, %v753_v31 }
 0x105   : > { %v756_v51 = vmul.f32 0.044715, %v754_v33 }
 0x106   : > { %v757_v34 = vadd.f32 %v755_v48, %v747_v29 }
 0x107   : > { %v758_v1 = vadd.f32 %v756_v51, %v748_v38 }
 0x108   : > { %v759_v37 = vmul.f32 0.7978846, %v757_v34 }
 0x109   : > { %v760_v36 = vmul.f32 0.7978846, %v758_v1 }
 0x10a   : > { %1081 = vtanh.f32 %v759_v37 }
 0x10b   : > { %1083 = vtanh.f32 %v760_v36 }
 0x114   : > { %v1082_v43 = vpop.eup %1081 }
 0x115   : > { %v1084_v54 = vpop.eup %1083  ;;  %v763_v45 = vadd.f32 1.0, %v1082_v43 }
 0x116   : > { %v764_v23 = vadd.f32 1.0, %v1084_v54 }
 0x117   : > { %v765_v32 = vmul.f32 %v763_v45, %v749_v41 }
 0x118   : > { %v766_v46 = vmul.f32 %v764_v23, %v750_v44 }
 0x119   : > { %767 = vst [vmem:[%s238_s10] sm:$0xff] %v765_v32 }
 0x11a   : > { %768 = vst [vmem:[%s238_s10 + $0x8] sm:$0xff] %v766_v46 }
 0x11b   : > { %1126 = shalt.err (!%p1123_p7)
}
 0x11c   : > { %s1127_s4 = scalar_lea.hbm %s1659_s20, 256  ;;  %s1131_s28 = scalar_lea.hbm %s1707_s3, 768 }
 0x11d   : > { %p1128_p8 = scmp.ne.s32.totalorder %s1659_s20, %s1127_s4  ;;  %p1132_p11 = scmp.lt.u32.totalorder %s1659_s20, %s1707_s3 }
 0x11e   : > { %p1133_p12 = scmp.lt.u32.totalorder %s1131_s28, %s1127_s4  ;;  %p1135_p13 = scmp.lt.u32.totalorder %s1127_s4, %s1659_s20 }
 0x11f   : > { %p1129_p4 = pnand %p1128_p8, %p1722_p0 }
 0x120   : > { %p1134_p5 = por %p1133_p12, %p1132_p11 }
 0x121   : > { %p1130_p6 = pneg %p1129_p4 }
 0x122   : > { %p1136_p3 = por %p1135_p13, %p1134_p5 }
 0x124   : > { %p1137_p9 = pnand %p1136_p3, %p1130_p6 }
 0x126   : > { %1140 = shalt.err (!%p1137_p9)
}
 0x127   : > { %s1198_s8 = smov 128   ;;  %s1199_s9 = smov 8  }
 0x128   : > { %973 = dma.vmem_to_hbm [thread:$0]  (%p1722_p0), %s1661_s11, 256, %s1659_s20, %s770_s16, %s1198_s8, %s1198_s8, %s1199_s9  }
 0x129 PF: > { %p990_p10 = scmp.ge.s32.totalorder %s1187_s15, 2  ;;  %s798_s10 = sand.u32 1, %s1175_s12  }
 0x12a   : > { %p1723_p1 = scmp.ne.s32.totalorder %s1714_s25, 0  ;;  %s799_s17 = scalar_lea.sflag [#allocation4], %s798_s10 }
 0x12c   : > { %p983_p2 = pnand %p990_p10, %p1723_p1 }
 0x12e   : > { %1170 = dma.done.wait (!%p983_p2), %s799_s17, 256  }
 0x12f   : > { %1172 = vsyncadd (!%p983_p2), %s799_s17, 4294967040  ;;  %p18_p7 = scmp.ge.s32.totalorder %s1245_s18, 5   ;;  %s1724_s12 = smov %s1179_s13 }
 0x130   : > { %s1725_s13 = smov %s1183_s14  ;;  %s1726_s14 = smov %s1257_s21 }
 0x131   : > { %s1727_s15 = smov %s1245_s18  ;;  %20 = sbr.rel (!%p18_p7) target bundleno = 7 (0x7), region = 94 }
 0x138   :  { %804 = vsyncpa [#allocation3], 1 }
 0x139   :  { %806 = vsyncpa [#allocation3 + $0x1], 1 }
 0x13a   :  { %807 = vsyncpa [#allocation4], 1 }
 0x13b   :  { %809 = vsyncpa [#allocation4 + $0x1], 1 }
 0x13c   :  { %810 = vsyncpa [#allocation5], 1 }
 0x13d   :  { %812 = vsyncpa [#allocation5 + $0x1], 1 }
 0x13e   :  { %813 = vsyncpa [#allocation6], 1 }
 0x13f   :  { %815 = vsyncpa [#allocation6 + $0x1], 1 }

</bundles_post_ra>
